<compile_context>
chip_gen: v5e
topology: v5e:2x2
jax: 0.10.0
libtpu: 0.0.40
codegen_flags: <defaults>
</compile_context>

<pallas_src>
import functools

import jax
import jax.numpy as jnp
from jax.experimental import pallas as pl
from jax.experimental.pallas import tpu as pltpu


def _spatial_attention_kernel(w_ref, x_ref, o_ref, sum_ref, max_ref,
                              *, C, H, W, K):
    """One grid step: accumulate channel sum/max for one (batch, c-block)."""
    c_idx = pl.program_id(1)

    # Init accumulators at the start of each batch's channel reduction.
    @pl.when(c_idx == 0)
    def _():
        sum_ref[...] = jnp.zeros_like(sum_ref)
        max_ref[...] = jnp.full_like(max_ref, -jnp.inf)

    xb = x_ref[0]                                      # (c_block, Hp, Wp) f32
    sum_ref[...] += jnp.sum(xb, axis=0)                # running channel sum
    max_ref[...] = jnp.maximum(max_ref[...], jnp.max(xb, axis=0))

    # Finalize: 5x5 conv over the two pooled maps + sigmoid, one store.
    @pl.when(c_idx == pl.num_programs(1) - 1)
    def _():
        avg = sum_ref[...] * (1.0 / C)                 # (Hp, Wp)
        mx = max_ref[...]                              # (Hp, Wp)
        kk = K * K
        acc = jnp.zeros((H, W), jnp.float32)
        for ki in range(K):                            # static unroll: 2*K*K FMAs
            for kj in range(K):
                a_win = avg[ki:ki + H, kj:kj + W]
                m_win = mx[ki:ki + H, kj:kj + W]
                acc = acc + w_ref[ki * K + kj] * a_win \
                          + w_ref[kk + ki * K + kj] * m_win
        o_ref[0, 0] = 1.0 / (1.0 + jnp.exp(-acc))      # sigmoid


def spatial_attention_pallas(x, weight, *, c_block=None):
    """x: (B, C, H, W) f32.  weight: (1, 2, K, K) f32 (Conv2d(2, 1, K), no bias)."""
    B, C, H, W = x.shape
    O, I, K, K2 = weight.shape
    assert O == 1 and I == 2 and K == K2, "expect Conv2d(2, 1, k, k) weight"
    P = K // 2
    Hp, Wp = H + 2 * P, W + 2 * P

    if c_block is None:
        c_block = C if C <= 128 else 128
    assert C % c_block == 0, "c_block must divide C"
    nc = C // c_block

    # Zero-pad spatially up front: pooled values at padded positions are 0,
    # exactly matching the conv's zero padding of the pooled maps.
    x_pad = jnp.pad(x.astype(jnp.float32), ((0, 0), (0, 0), (P, P), (P, P)))
    # Taps: first K*K for the avg map (input channel 0), then K*K for the max map.
    w_flat = weight.astype(jnp.float32).reshape(-1)    # (2*K*K,)

    kernel = functools.partial(_spatial_attention_kernel, C=C, H=H, W=W, K=K)

    grid_spec = pltpu.PrefetchScalarGridSpec(
        num_scalar_prefetch=0,
        grid=(B, nc),
        in_specs=[
            # conv taps: tiny, resident in SMEM, read as scalars
            pl.BlockSpec(memory_space=pltpu.MemorySpace.SMEM),
            # streamed channel block of the padded image
            pl.BlockSpec((1, c_block, Hp, Wp), lambda b, c: (b, c, 0, 0)),
        ],
        out_specs=pl.BlockSpec((1, 1, H, W), lambda b, c: (b, 0, 0, 0)),
        scratch_shapes=[
            pltpu.VMEM((Hp, Wp), jnp.float32),   # running channel sum
            pltpu.VMEM((Hp, Wp), jnp.float32),   # running channel max
        ],
    )

    flops = B * (2 * C * Hp * Wp + 4 * K * K * H * W + 2 * H * W)
    bytes_accessed = x_pad.size * 4 + B * H * W * 4 + w_flat.size * 4

    return pl.pallas_call(
        kernel,
        out_shape=jax.ShapeDtypeStruct((B, 1, H, W), jnp.float32),
        grid_spec=grid_spec,
        compiler_params=pltpu.CompilerParams(
            dimension_semantics=("parallel", "arbitrary")),
        cost_estimate=pl.CostEstimate(
            flops=int(flops),
            transcendentals=int(B * H * W),
            bytes_accessed=int(bytes_accessed)),
    )(w_flat, x_pad)


def spatial_attention_reference(x, weight):
    """Pure-JAX reference mirroring the PyTorch forward exactly."""
    avg = jnp.mean(x, axis=1, keepdims=True)
    mx = jnp.max(x, axis=1, keepdims=True)
    cat = jnp.concatenate([avg, mx], axis=1)           # (B, 2, H, W)
    K = weight.shape[-1]
    p = K // 2
    out = jax.lax.conv_general_dilated(
        cat, weight, window_strides=(1, 1),
        padding=((p, p), (p, p)),
        dimension_numbers=("NCHW", "OIHW", "NCHW"))
    return jax.nn.sigmoid(out)


if __name__ == "__main__":
    B, C, H, W = 2, 32, 16, 16
    K = 5

    key = jax.random.PRNGKey(0)
    kx, kw = jax.random.split(key)

    x = jax.random.normal(kx, (B, C, H, W), jnp.float32)
    # kaiming-ish init for the 2->1 conv, no bias (module uses bias=False)
    weight = jax.random.normal(kw, (1, 2, K, K), jnp.float32) * (2.0 / (2 * K * K)) ** 0.5

    # c_block=16 -> 2 channel-reduction steps per image: exercises the
    # pl.when init/accumulate/finalize path as well as the pipelined DMAs.
    y = spatial_attention_pallas(x, weight, c_block=16)
    y = jax.block_until_ready(y)

    y_ref = spatial_attention_reference(x, weight)
    assert y.shape == (B, 1, H, W)
    assert jnp.allclose(y, y_ref, rtol=1e-4, atol=1e-5), "mismatch vs reference"

    print("KERNEL_OK")
</pallas_src>

<mosaic_0001>
module attributes {stable_mosaic.version = 11 : i64} {
  func.func @_spatial_attention_kernel(%arg0: i32, %arg1: i32, %arg2: memref<50xf32, #tpu.memory_space<smem>>, %arg3: memref<1x16x20x20xf32, #tpu.memory_space<vmem>>, %arg4: memref<1x1x16x16xf32, #tpu.memory_space<vmem>>, %arg5: memref<20x20xf32, #tpu.memory_space<vmem>>, %arg6: memref<20x20xf32, #tpu.memory_space<vmem>>) attributes {dimension_semantics = [#tpu.dimension_semantics<parallel>, #tpu.dimension_semantics<arbitrary>], iteration_bounds = array<i64: 2, 2>, scalar_prefetch = 0 : i64, scratch_operands = 2 : i64, tpu.core_type = #tpu.core_type<tc>, window_params = [{transform_indices = @transform_0, window_bounds = array<i64: 50>}, {transform_indices = @transform_1, window_bounds = array<i64: 1, 16, 20, 20>}, {transform_indices = @transform_2, window_bounds = array<i64: 1, 1, 16, 16>}]} {
    %c0_i32 = arith.constant 0 : i32
    %0 = arith.cmpi eq, %arg1, %c0_i32 : i32
    %1 = arith.extui %0 : i1 to i32
    %c0_i32_0 = arith.constant 0 : i32
    %2 = arith.cmpi ne, %1, %c0_i32_0 : i32
    scf.if %2 {
      %cst_14 = arith.constant 0.000000e+00 : f32
      %16 = vector.broadcast %cst_14 : f32 to vector<20x20xf32>
      %c0_15 = arith.constant 0 : index
      %c0_16 = arith.constant 0 : index
      %17 = vector.load %arg5[%c0_15, %c0_16] : memref<20x20xf32, #tpu.memory_space<vmem>>, vector<20x20xf32>
      tpu.vector_store %arg5[%c0_15, %c0_16], %16 {strides = array<i32>} : memref<20x20xf32, #tpu.memory_space<vmem>>, vector<20x20xf32>,
      %cst_17 = arith.constant 0xFF800000 : f32
      %18 = vector.broadcast %cst_17 : f32 to vector<20x20xf32>
      %c0_18 = arith.constant 0 : index
      %c0_19 = arith.constant 0 : index
      %19 = vector.load %arg6[%c0_18, %c0_19] : memref<20x20xf32, #tpu.memory_space<vmem>>, vector<20x20xf32>
      tpu.vector_store %arg6[%c0_18, %c0_19], %18 {strides = array<i32>} : memref<20x20xf32, #tpu.memory_space<vmem>>, vector<20x20xf32>,
    } else {
    }
    %c0 = arith.constant 0 : index
    %c0_1 = arith.constant 0 : index
    %c0_2 = arith.constant 0 : index
    %c0_3 = arith.constant 0 : index
    %3 = vector.load %arg3[%c0, %c0_1, %c0_2, %c0_3] : memref<1x16x20x20xf32, #tpu.memory_space<vmem>>, vector<1x16x20x20xf32>
    %4 = vector.shape_cast %3 : vector<1x16x20x20xf32> to vector<16x20x20xf32>
    %c0_4 = arith.constant 0 : index
    %c0_5 = arith.constant 0 : index
    %5 = vector.load %arg5[%c0_4, %c0_5] : memref<20x20xf32, #tpu.memory_space<vmem>>, vector<20x20xf32>
    %cst = arith.constant dense<0.000000e+00> : vector<20x20xf32>
    %6 = vector.multi_reduction <add>, %4, %cst [0] : vector<16x20x20xf32> to vector<20x20xf32>
    %7 = arith.addf %5, %6 : vector<20x20xf32>
    %c0_6 = arith.constant 0 : index
    %c0_7 = arith.constant 0 : index
    %8 = vector.load %arg5[%c0_6, %c0_7] : memref<20x20xf32, #tpu.memory_space<vmem>>, vector<20x20xf32>
    tpu.vector_store %arg5[%c0_6, %c0_7], %7 {strides = array<i32>} : memref<20x20xf32, #tpu.memory_space<vmem>>, vector<20x20xf32>,
    %c0_8 = arith.constant 0 : index
    %c0_9 = arith.constant 0 : index
    %9 = vector.load %arg6[%c0_8, %c0_9] : memref<20x20xf32, #tpu.memory_space<vmem>>, vector<20x20xf32>
    %cst_10 = arith.constant dense<0xFF800000> : vector<20x20xf32>
    %10 = vector.multi_reduction <maximumf>, %4, %cst_10 [0] : vector<16x20x20xf32> to vector<20x20xf32>
    %11 = arith.maximumf %9, %10 : vector<20x20xf32>
    %c0_11 = arith.constant 0 : index
    %c0_12 = arith.constant 0 : index
    %12 = vector.load %arg6[%c0_11, %c0_12] : memref<20x20xf32, #tpu.memory_space<vmem>>, vector<20x20xf32>
    tpu.vector_store %arg6[%c0_11, %c0_12], %11 {strides = array<i32>} : memref<20x20xf32, #tpu.memory_space<vmem>>, vector<20x20xf32>,
    %c1_i32 = arith.constant 1 : i32
    %13 = arith.cmpi eq, %arg1, %c1_i32 : i32
    %14 = arith.extui %13 : i1 to i32
    %c0_i32_13 = arith.constant 0 : i32
    %15 = arith.cmpi ne, %14, %c0_i32_13 : i32
    scf.if %15 {
      %c0_14 = arith.constant 0 : index
      %c0_15 = arith.constant 0 : index
      %16 = vector.load %arg5[%c0_14, %c0_15] : memref<20x20xf32, #tpu.memory_space<vmem>>, vector<20x20xf32>
      %cst_16 = arith.constant 3.125000e-02 : f32
      %17 = vector.broadcast %cst_16 : f32 to vector<20x20xf32>
      %18 = arith.mulf %16, %17 : vector<20x20xf32>
      %c0_17 = arith.constant 0 : index
      %c0_18 = arith.constant 0 : index
      %19 = vector.load %arg6[%c0_17, %c0_18] : memref<20x20xf32, #tpu.memory_space<vmem>>, vector<20x20xf32>
      %cst_19 = arith.constant 0.000000e+00 : f32
      %20 = vector.broadcast %cst_19 : f32 to vector<16x16xf32>
      %21 = vector.extract_strided_slice %18 {offsets = [0, 0], sizes = [16, 16], strides = [1, 1]} : vector<20x20xf32> to vector<16x16xf32>
      %22 = vector.extract_strided_slice %19 {offsets = [0, 0], sizes = [16, 16], strides = [1, 1]} : vector<20x20xf32> to vector<16x16xf32>
      %c0_20 = arith.constant 0 : index
      %23 = memref.load %arg2[%c0_20] : memref<50xf32, #tpu.memory_space<smem>>
      %24 = vector.broadcast %23 : f32 to vector<16x16xf32>
      %25 = arith.mulf %24, %21 : vector<16x16xf32>
      %26 = arith.addf %20, %25 : vector<16x16xf32>
      %c25 = arith.constant 25 : index
      %27 = memref.load %arg2[%c25] : memref<50xf32, #tpu.memory_space<smem>>
      %28 = vector.broadcast %27 : f32 to vector<16x16xf32>
      %29 = arith.mulf %28, %22 : vector<16x16xf32>
      %30 = arith.addf %26, %29 : vector<16x16xf32>
      %31 = vector.extract_strided_slice %18 {offsets = [0, 1], sizes = [16, 16], strides = [1, 1]} : vector<20x20xf32> to vector<16x16xf32>
      %32 = vector.extract_strided_slice %19 {offsets = [0, 1], sizes = [16, 16], strides = [1, 1]} : vector<20x20xf32> to vector<16x16xf32>
      %c1 = arith.constant 1 : index
      %33 = memref.load %arg2[%c1] : memref<50xf32, #tpu.memory_space<smem>>
      %34 = vector.broadcast %33 : f32 to vector<16x16xf32>
      %35 = arith.mulf %34, %31 : vector<16x16xf32>
      %36 = arith.addf %30, %35 : vector<16x16xf32>
      %c26 = arith.constant 26 : index
      %37 = memref.load %arg2[%c26] : memref<50xf32, #tpu.memory_space<smem>>
      %38 = vector.broadcast %37 : f32 to vector<16x16xf32>
      %39 = arith.mulf %38, %32 : vector<16x16xf32>
      %40 = arith.addf %36, %39 : vector<16x16xf32>
      %41 = vector.extract_strided_slice %18 {offsets = [0, 2], sizes = [16, 16], strides = [1, 1]} : vector<20x20xf32> to vector<16x16xf32>
      %42 = vector.extract_strided_slice %19 {offsets = [0, 2], sizes = [16, 16], strides = [1, 1]} : vector<20x20xf32> to vector<16x16xf32>
      %c2 = arith.constant 2 : index
      %43 = memref.load %arg2[%c2] : memref<50xf32, #tpu.memory_space<smem>>
      %44 = vector.broadcast %43 : f32 to vector<16x16xf32>
      %45 = arith.mulf %44, %41 : vector<16x16xf32>
      %46 = arith.addf %40, %45 : vector<16x16xf32>
      %c27 = arith.constant 27 : index
      %47 = memref.load %arg2[%c27] : memref<50xf32, #tpu.memory_space<smem>>
      %48 = vector.broadcast %47 : f32 to vector<16x16xf32>
      %49 = arith.mulf %48, %42 : vector<16x16xf32>
      %50 = arith.addf %46, %49 : vector<16x16xf32>
      %51 = vector.extract_strided_slice %18 {offsets = [0, 3], sizes = [16, 16], strides = [1, 1]} : vector<20x20xf32> to vector<16x16xf32>
      %52 = vector.extract_strided_slice %19 {offsets = [0, 3], sizes = [16, 16], strides = [1, 1]} : vector<20x20xf32> to vector<16x16xf32>
      %c3 = arith.constant 3 : index
      %53 = memref.load %arg2[%c3] : memref<50xf32, #tpu.memory_space<smem>>
      %54 = vector.broadcast %53 : f32 to vector<16x16xf32>
      %55 = arith.mulf %54, %51 : vector<16x16xf32>
      %56 = arith.addf %50, %55 : vector<16x16xf32>
      %c28 = arith.constant 28 : index
      %57 = memref.load %arg2[%c28] : memref<50xf32, #tpu.memory_space<smem>>
      %58 = vector.broadcast %57 : f32 to vector<16x16xf32>
      %59 = arith.mulf %58, %52 : vector<16x16xf32>
      %60 = arith.addf %56, %59 : vector<16x16xf32>
      %61 = vector.extract_strided_slice %18 {offsets = [0, 4], sizes = [16, 16], strides = [1, 1]} : vector<20x20xf32> to vector<16x16xf32>
      %62 = vector.extract_strided_slice %19 {offsets = [0, 4], sizes = [16, 16], strides = [1, 1]} : vector<20x20xf32> to vector<16x16xf32>
      %c4 = arith.constant 4 : index
      %63 = memref.load %arg2[%c4] : memref<50xf32, #tpu.memory_space<smem>>
      %64 = vector.broadcast %63 : f32 to vector<16x16xf32>
      %65 = arith.mulf %64, %61 : vector<16x16xf32>
      %66 = arith.addf %60, %65 : vector<16x16xf32>
      %c29 = arith.constant 29 : index
      %67 = memref.load %arg2[%c29] : memref<50xf32, #tpu.memory_space<smem>>
      %68 = vector.broadcast %67 : f32 to vector<16x16xf32>
      %69 = arith.mulf %68, %62 : vector<16x16xf32>
      %70 = arith.addf %66, %69 : vector<16x16xf32>
      %71 = vector.extract_strided_slice %18 {offsets = [1, 0], sizes = [16, 16], strides = [1, 1]} : vector<20x20xf32> to vector<16x16xf32>
      %72 = vector.extract_strided_slice %19 {offsets = [1, 0], sizes = [16, 16], strides = [1, 1]} : vector<20x20xf32> to vector<16x16xf32>
      %c5 = arith.constant 5 : index
      %73 = memref.load %arg2[%c5] : memref<50xf32, #tpu.memory_space<smem>>
      %74 = vector.broadcast %73 : f32 to vector<16x16xf32>
      %75 = arith.mulf %74, %71 : vector<16x16xf32>
      %76 = arith.addf %70, %75 : vector<16x16xf32>
      %c30 = arith.constant 30 : index
      %77 = memref.load %arg2[%c30] : memref<50xf32, #tpu.memory_space<smem>>
      %78 = vector.broadcast %77 : f32 to vector<16x16xf32>
      %79 = arith.mulf %78, %72 : vector<16x16xf32>
      %80 = arith.addf %76, %79 : vector<16x16xf32>
      %81 = vector.extract_strided_slice %18 {offsets = [1, 1], sizes = [16, 16], strides = [1, 1]} : vector<20x20xf32> to vector<16x16xf32>
      %82 = vector.extract_strided_slice %19 {offsets = [1, 1], sizes = [16, 16], strides = [1, 1]} : vector<20x20xf32> to vector<16x16xf32>
      %c6 = arith.constant 6 : index
      %83 = memref.load %arg2[%c6] : memref<50xf32, #tpu.memory_space<smem>>
      %84 = vector.broadcast %83 : f32 to vector<16x16xf32>
      %85 = arith.mulf %84, %81 : vector<16x16xf32>
      %86 = arith.addf %80, %85 : vector<16x16xf32>
      %c31 = arith.constant 31 : index
      %87 = memref.load %arg2[%c31] : memref<50xf32, #tpu.memory_space<smem>>
      %88 = vector.broadcast %87 : f32 to vector<16x16xf32>
      %89 = arith.mulf %88, %82 : vector<16x16xf32>
      %90 = arith.addf %86, %89 : vector<16x16xf32>
      %91 = vector.extract_strided_slice %18 {offsets = [1, 2], sizes = [16, 16], strides = [1, 1]} : vector<20x20xf32> to vector<16x16xf32>
      %92 = vector.extract_strided_slice %19 {offsets = [1, 2], sizes = [16, 16], strides = [1, 1]} : vector<20x20xf32> to vector<16x16xf32>
      %c7 = arith.constant 7 : index
      %93 = memref.load %arg2[%c7] : memref<50xf32, #tpu.memory_space<smem>>
      %94 = vector.broadcast %93 : f32 to vector<16x16xf32>
      %95 = arith.mulf %94, %91 : vector<16x16xf32>
      %96 = arith.addf %90, %95 : vector<16x16xf32>
      %c32 = arith.constant 32 : index
      %97 = memref.load %arg2[%c32] : memref<50xf32, #tpu.memory_space<smem>>
      %98 = vector.broadcast %97 : f32 to vector<16x16xf32>
      %99 = arith.mulf %98, %92 : vector<16x16xf32>
      %100 = arith.addf %96, %99 : vector<16x16xf32>
      %101 = vector.extract_strided_slice %18 {offsets = [1, 3], sizes = [16, 16], strides = [1, 1]} : vector<20x20xf32> to vector<16x16xf32>
      %102 = vector.extract_strided_slice %19 {offsets = [1, 3], sizes = [16, 16], strides = [1, 1]} : vector<20x20xf32> to vector<16x16xf32>
      %c8 = arith.constant 8 : index
      %103 = memref.load %arg2[%c8] : memref<50xf32, #tpu.memory_space<smem>>
      %104 = vector.broadcast %103 : f32 to vector<16x16xf32>
      %105 = arith.mulf %104, %101 : vector<16x16xf32>
      %106 = arith.addf %100, %105 : vector<16x16xf32>
      %c33 = arith.constant 33 : index
      %107 = memref.load %arg2[%c33] : memref<50xf32, #tpu.memory_space<smem>>
      %108 = vector.broadcast %107 : f32 to vector<16x16xf32>
      %109 = arith.mulf %108, %102 : vector<16x16xf32>
      %110 = arith.addf %106, %109 : vector<16x16xf32>
      %111 = vector.extract_strided_slice %18 {offsets = [1, 4], sizes = [16, 16], strides = [1, 1]} : vector<20x20xf32> to vector<16x16xf32>
      %112 = vector.extract_strided_slice %19 {offsets = [1, 4], sizes = [16, 16], strides = [1, 1]} : vector<20x20xf32> to vector<16x16xf32>
      %c9 = arith.constant 9 : index
      %113 = memref.load %arg2[%c9] : memref<50xf32, #tpu.memory_space<smem>>
      %114 = vector.broadcast %113 : f32 to vector<16x16xf32>
      %115 = arith.mulf %114, %111 : vector<16x16xf32>
      %116 = arith.addf %110, %115 : vector<16x16xf32>
      %c34 = arith.constant 34 : index
      %117 = memref.load %arg2[%c34] : memref<50xf32, #tpu.memory_space<smem>>
      %118 = vector.broadcast %117 : f32 to vector<16x16xf32>
      %119 = arith.mulf %118, %112 : vector<16x16xf32>
      %120 = arith.addf %116, %119 : vector<16x16xf32>
      %121 = vector.extract_strided_slice %18 {offsets = [2, 0], sizes = [16, 16], strides = [1, 1]} : vector<20x20xf32> to vector<16x16xf32>
      %122 = vector.extract_strided_slice %19 {offsets = [2, 0], sizes = [16, 16], strides = [1, 1]} : vector<20x20xf32> to vector<16x16xf32>
      %c10 = arith.constant 10 : index
      %123 = memref.load %arg2[%c10] : memref<50xf32, #tpu.memory_space<smem>>
      %124 = vector.broadcast %123 : f32 to vector<16x16xf32>
      %125 = arith.mulf %124, %121 : vector<16x16xf32>
      %126 = arith.addf %120, %125 : vector<16x16xf32>
      %c35 = arith.constant 35 : index
      %127 = memref.load %arg2[%c35] : memref<50xf32, #tpu.memory_space<smem>>
      %128 = vector.broadcast %127 : f32 to vector<16x16xf32>
      %129 = arith.mulf %128, %122 : vector<16x16xf32>
      %130 = arith.addf %126, %129 : vector<16x16xf32>
      %131 = vector.extract_strided_slice %18 {offsets = [2, 1], sizes = [16, 16], strides = [1, 1]} : vector<20x20xf32> to vector<16x16xf32>
      %132 = vector.extract_strided_slice %19 {offsets = [2, 1], sizes = [16, 16], strides = [1, 1]} : vector<20x20xf32> to vector<16x16xf32>
      %c11 = arith.constant 11 : index
      %133 = memref.load %arg2[%c11] : memref<50xf32, #tpu.memory_space<smem>>
      %134 = vector.broadcast %133 : f32 to vector<16x16xf32>
      %135 = arith.mulf %134, %131 : vector<16x16xf32>
      %136 = arith.addf %130, %135 : vector<16x16xf32>
      %c36 = arith.constant 36 : index
      %137 = memref.load %arg2[%c36] : memref<50xf32, #tpu.memory_space<smem>>
      %138 = vector.broadcast %137 : f32 to vector<16x16xf32>
      %139 = arith.mulf %138, %132 : vector<16x16xf32>
      %140 = arith.addf %136, %139 : vector<16x16xf32>
      %141 = vector.extract_strided_slice %18 {offsets = [2, 2], sizes = [16, 16], strides = [1, 1]} : vector<20x20xf32> to vector<16x16xf32>
      %142 = vector.extract_strided_slice %19 {offsets = [2, 2], sizes = [16, 16], strides = [1, 1]} : vector<20x20xf32> to vector<16x16xf32>
      %c12 = arith.constant 12 : index
      %143 = memref.load %arg2[%c12] : memref<50xf32, #tpu.memory_space<smem>>
      %144 = vector.broadcast %143 : f32 to vector<16x16xf32>
      %145 = arith.mulf %144, %141 : vector<16x16xf32>
      %146 = arith.addf %140, %145 : vector<16x16xf32>
      %c37 = arith.constant 37 : index
      %147 = memref.load %arg2[%c37] : memref<50xf32, #tpu.memory_space<smem>>
      %148 = vector.broadcast %147 : f32 to vector<16x16xf32>
      %149 = arith.mulf %148, %142 : vector<16x16xf32>
      %150 = arith.addf %146, %149 : vector<16x16xf32>
      %151 = vector.extract_strided_slice %18 {offsets = [2, 3], sizes = [16, 16], strides = [1, 1]} : vector<20x20xf32> to vector<16x16xf32>
      %152 = vector.extract_strided_slice %19 {offsets = [2, 3], sizes = [16, 16], strides = [1, 1]} : vector<20x20xf32> to vector<16x16xf32>
      %c13 = arith.constant 13 : index
      %153 = memref.load %arg2[%c13] : memref<50xf32, #tpu.memory_space<smem>>
      %154 = vector.broadcast %153 : f32 to vector<16x16xf32>
      %155 = arith.mulf %154, %151 : vector<16x16xf32>
      %156 = arith.addf %150, %155 : vector<16x16xf32>
      %c38 = arith.constant 38 : index
      %157 = memref.load %arg2[%c38] : memref<50xf32, #tpu.memory_space<smem>>
      %158 = vector.broadcast %157 : f32 to vector<16x16xf32>
      %159 = arith.mulf %158, %152 : vector<16x16xf32>
      %160 = arith.addf %156, %159 : vector<16x16xf32>
      %161 = vector.extract_strided_slice %18 {offsets = [2, 4], sizes = [16, 16], strides = [1, 1]} : vector<20x20xf32> to vector<16x16xf32>
      %162 = vector.extract_strided_slice %19 {offsets = [2, 4], sizes = [16, 16], strides = [1, 1]} : vector<20x20xf32> to vector<16x16xf32>
      %c14 = arith.constant 14 : index
      %163 = memref.load %arg2[%c14] : memref<50xf32, #tpu.memory_space<smem>>
      %164 = vector.broadcast %163 : f32 to vector<16x16xf32>
      %165 = arith.mulf %164, %161 : vector<16x16xf32>
      %166 = arith.addf %160, %165 : vector<16x16xf32>
      %c39 = arith.constant 39 : index
      %167 = memref.load %arg2[%c39] : memref<50xf32, #tpu.memory_space<smem>>
      %168 = vector.broadcast %167 : f32 to vector<16x16xf32>
      %169 = arith.mulf %168, %162 : vector<16x16xf32>
      %170 = arith.addf %166, %169 : vector<16x16xf32>
      %171 = vector.extract_strided_slice %18 {offsets = [3, 0], sizes = [16, 16], strides = [1, 1]} : vector<20x20xf32> to vector<16x16xf32>
      %172 = vector.extract_strided_slice %19 {offsets = [3, 0], sizes = [16, 16], strides = [1, 1]} : vector<20x20xf32> to vector<16x16xf32>
      %c15 = arith.constant 15 : index
      %173 = memref.load %arg2[%c15] : memref<50xf32, #tpu.memory_space<smem>>
      %174 = vector.broadcast %173 : f32 to vector<16x16xf32>
      %175 = arith.mulf %174, %171 : vector<16x16xf32>
      %176 = arith.addf %170, %175 : vector<16x16xf32>
      %c40 = arith.constant 40 : index
      %177 = memref.load %arg2[%c40] : memref<50xf32, #tpu.memory_space<smem>>
      %178 = vector.broadcast %177 : f32 to vector<16x16xf32>
      %179 = arith.mulf %178, %172 : vector<16x16xf32>
      %180 = arith.addf %176, %179 : vector<16x16xf32>
      %181 = vector.extract_strided_slice %18 {offsets = [3, 1], sizes = [16, 16], strides = [1, 1]} : vector<20x20xf32> to vector<16x16xf32>
      %182 = vector.extract_strided_slice %19 {offsets = [3, 1], sizes = [16, 16], strides = [1, 1]} : vector<20x20xf32> to vector<16x16xf32>
      %c16 = arith.constant 16 : index
      %183 = memref.load %arg2[%c16] : memref<50xf32, #tpu.memory_space<smem>>
      %184 = vector.broadcast %183 : f32 to vector<16x16xf32>
      %185 = arith.mulf %184, %181 : vector<16x16xf32>
      %186 = arith.addf %180, %185 : vector<16x16xf32>
      %c41 = arith.constant 41 : index
      %187 = memref.load %arg2[%c41] : memref<50xf32, #tpu.memory_space<smem>>
      %188 = vector.broadcast %187 : f32 to vector<16x16xf32>
      %189 = arith.mulf %188, %182 : vector<16x16xf32>
      %190 = arith.addf %186, %189 : vector<16x16xf32>
      %191 = vector.extract_strided_slice %18 {offsets = [3, 2], sizes = [16, 16], strides = [1, 1]} : vector<20x20xf32> to vector<16x16xf32>
      %192 = vector.extract_strided_slice %19 {offsets = [3, 2], sizes = [16, 16], strides = [1, 1]} : vector<20x20xf32> to vector<16x16xf32>
      %c17 = arith.constant 17 : index
      %193 = memref.load %arg2[%c17] : memref<50xf32, #tpu.memory_space<smem>>
      %194 = vector.broadcast %193 : f32 to vector<16x16xf32>
      %195 = arith.mulf %194, %191 : vector<16x16xf32>
      %196 = arith.addf %190, %195 : vector<16x16xf32>
      %c42 = arith.constant 42 : index
      %197 = memref.load %arg2[%c42] : memref<50xf32, #tpu.memory_space<smem>>
      %198 = vector.broadcast %197 : f32 to vector<16x16xf32>
      %199 = arith.mulf %198, %192 : vector<16x16xf32>
      %200 = arith.addf %196, %199 : vector<16x16xf32>
      %201 = vector.extract_strided_slice %18 {offsets = [3, 3], sizes = [16, 16], strides = [1, 1]} : vector<20x20xf32> to vector<16x16xf32>
      %202 = vector.extract_strided_slice %19 {offsets = [3, 3], sizes = [16, 16], strides = [1, 1]} : vector<20x20xf32> to vector<16x16xf32>
      %c18 = arith.constant 18 : index
      %203 = memref.load %arg2[%c18] : memref<50xf32, #tpu.memory_space<smem>>
      %204 = vector.broadcast %203 : f32 to vector<16x16xf32>
      %205 = arith.mulf %204, %201 : vector<16x16xf32>
      %206 = arith.addf %200, %205 : vector<16x16xf32>
      %c43 = arith.constant 43 : index
      %207 = memref.load %arg2[%c43] : memref<50xf32, #tpu.memory_space<smem>>
      %208 = vector.broadcast %207 : f32 to vector<16x16xf32>
      %209 = arith.mulf %208, %202 : vector<16x16xf32>
      %210 = arith.addf %206, %209 : vector<16x16xf32>
      %211 = vector.extract_strided_slice %18 {offsets = [3, 4], sizes = [16, 16], strides = [1, 1]} : vector<20x20xf32> to vector<16x16xf32>
      %212 = vector.extract_strided_slice %19 {offsets = [3, 4], sizes = [16, 16], strides = [1, 1]} : vector<20x20xf32> to vector<16x16xf32>
      %c19 = arith.constant 19 : index
      %213 = memref.load %arg2[%c19] : memref<50xf32, #tpu.memory_space<smem>>
      %214 = vector.broadcast %213 : f32 to vector<16x16xf32>
      %215 = arith.mulf %214, %211 : vector<16x16xf32>
      %216 = arith.addf %210, %215 : vector<16x16xf32>
      %c44 = arith.constant 44 : index
      %217 = memref.load %arg2[%c44] : memref<50xf32, #tpu.memory_space<smem>>
      %218 = vector.broadcast %217 : f32 to vector<16x16xf32>
      %219 = arith.mulf %218, %212 : vector<16x16xf32>
      %220 = arith.addf %216, %219 : vector<16x16xf32>
      %221 = vector.extract_strided_slice %18 {offsets = [4, 0], sizes = [16, 16], strides = [1, 1]} : vector<20x20xf32> to vector<16x16xf32>
      %222 = vector.extract_strided_slice %19 {offsets = [4, 0], sizes = [16, 16], strides = [1, 1]} : vector<20x20xf32> to vector<16x16xf32>
      %c20 = arith.constant 20 : index
      %223 = memref.load %arg2[%c20] : memref<50xf32, #tpu.memory_space<smem>>
      %224 = vector.broadcast %223 : f32 to vector<16x16xf32>
      %225 = arith.mulf %224, %221 : vector<16x16xf32>
      %226 = arith.addf %220, %225 : vector<16x16xf32>
      %c45 = arith.constant 45 : index
      %227 = memref.load %arg2[%c45] : memref<50xf32, #tpu.memory_space<smem>>
      %228 = vector.broadcast %227 : f32 to vector<16x16xf32>
      %229 = arith.mulf %228, %222 : vector<16x16xf32>
      %230 = arith.addf %226, %229 : vector<16x16xf32>
      %231 = vector.extract_strided_slice %18 {offsets = [4, 1], sizes = [16, 16], strides = [1, 1]} : vector<20x20xf32> to vector<16x16xf32>
      %232 = vector.extract_strided_slice %19 {offsets = [4, 1], sizes = [16, 16], strides = [1, 1]} : vector<20x20xf32> to vector<16x16xf32>
      %c21 = arith.constant 21 : index
      %233 = memref.load %arg2[%c21] : memref<50xf32, #tpu.memory_space<smem>>
      %234 = vector.broadcast %233 : f32 to vector<16x16xf32>
      %235 = arith.mulf %234, %231 : vector<16x16xf32>
      %236 = arith.addf %230, %235 : vector<16x16xf32>
      %c46 = arith.constant 46 : index
      %237 = memref.load %arg2[%c46] : memref<50xf32, #tpu.memory_space<smem>>
      %238 = vector.broadcast %237 : f32 to vector<16x16xf32>
      %239 = arith.mulf %238, %232 : vector<16x16xf32>
      %240 = arith.addf %236, %239 : vector<16x16xf32>
      %241 = vector.extract_strided_slice %18 {offsets = [4, 2], sizes = [16, 16], strides = [1, 1]} : vector<20x20xf32> to vector<16x16xf32>
      %242 = vector.extract_strided_slice %19 {offsets = [4, 2], sizes = [16, 16], strides = [1, 1]} : vector<20x20xf32> to vector<16x16xf32>
      %c22 = arith.constant 22 : index
      %243 = memref.load %arg2[%c22] : memref<50xf32, #tpu.memory_space<smem>>
      %244 = vector.broadcast %243 : f32 to vector<16x16xf32>
      %245 = arith.mulf %244, %241 : vector<16x16xf32>
      %246 = arith.addf %240, %245 : vector<16x16xf32>
      %c47 = arith.constant 47 : index
      %247 = memref.load %arg2[%c47] : memref<50xf32, #tpu.memory_space<smem>>
      %248 = vector.broadcast %247 : f32 to vector<16x16xf32>
      %249 = arith.mulf %248, %242 : vector<16x16xf32>
      %250 = arith.addf %246, %249 : vector<16x16xf32>
      %251 = vector.extract_strided_slice %18 {offsets = [4, 3], sizes = [16, 16], strides = [1, 1]} : vector<20x20xf32> to vector<16x16xf32>
      %252 = vector.extract_strided_slice %19 {offsets = [4, 3], sizes = [16, 16], strides = [1, 1]} : vector<20x20xf32> to vector<16x16xf32>
      %c23 = arith.constant 23 : index
      %253 = memref.load %arg2[%c23] : memref<50xf32, #tpu.memory_space<smem>>
      %254 = vector.broadcast %253 : f32 to vector<16x16xf32>
      %255 = arith.mulf %254, %251 : vector<16x16xf32>
      %256 = arith.addf %250, %255 : vector<16x16xf32>
      %c48 = arith.constant 48 : index
      %257 = memref.load %arg2[%c48] : memref<50xf32, #tpu.memory_space<smem>>
      %258 = vector.broadcast %257 : f32 to vector<16x16xf32>
      %259 = arith.mulf %258, %252 : vector<16x16xf32>
      %260 = arith.addf %256, %259 : vector<16x16xf32>
      %261 = vector.extract_strided_slice %18 {offsets = [4, 4], sizes = [16, 16], strides = [1, 1]} : vector<20x20xf32> to vector<16x16xf32>
      %262 = vector.extract_strided_slice %19 {offsets = [4, 4], sizes = [16, 16], strides = [1, 1]} : vector<20x20xf32> to vector<16x16xf32>
      %c24 = arith.constant 24 : index
      %263 = memref.load %arg2[%c24] : memref<50xf32, #tpu.memory_space<smem>>
      %264 = vector.broadcast %263 : f32 to vector<16x16xf32>
      %265 = arith.mulf %264, %261 : vector<16x16xf32>
      %266 = arith.addf %260, %265 : vector<16x16xf32>
      %c49 = arith.constant 49 : index
      %267 = memref.load %arg2[%c49] : memref<50xf32, #tpu.memory_space<smem>>
      %268 = vector.broadcast %267 : f32 to vector<16x16xf32>
      %269 = arith.mulf %268, %262 : vector<16x16xf32>
      %270 = arith.addf %266, %269 : vector<16x16xf32>
      %cst_21 = arith.constant 0.000000e+00 : f32
      %271 = vector.broadcast %cst_21 : f32 to vector<16x16xf32>
      %272 = arith.subf %271, %270 : vector<16x16xf32>
      %273 = math.exp %272 : vector<16x16xf32>
      %cst_22 = arith.constant 1.000000e+00 : f32
      %274 = vector.broadcast %cst_22 : f32 to vector<16x16xf32>
      %275 = arith.addf %274, %273 : vector<16x16xf32>
      %cst_23 = arith.constant 1.000000e+00 : f32
      %276 = vector.broadcast %cst_23 : f32 to vector<16x16xf32>
      %277 = arith.divf %276, %275 : vector<16x16xf32>
      %c0_24 = arith.constant 0 : index
      %c0_25 = arith.constant 0 : index
      %c0_26 = arith.constant 0 : index
      %c0_27 = arith.constant 0 : index
      %278 = vector.load %arg4[%c0_24, %c0_25, %c0_26, %c0_27] : memref<1x1x16x16xf32, #tpu.memory_space<vmem>>, vector<1x1x16x16xf32>
      %279 = vector.shape_cast %278 : vector<1x1x16x16xf32> to vector<16x16xf32>
      %280 = vector.shape_cast %277 : vector<16x16xf32> to vector<1x1x16x16xf32>
      tpu.vector_store %arg4[%c0_24, %c0_25, %c0_26, %c0_27], %280 {strides = array<i32>} : memref<1x1x16x16xf32, #tpu.memory_space<vmem>>, vector<1x1x16x16xf32>,
    } else {
    }
    return
  }
  func.func @transform_0(%arg0: i32, %arg1: i32) -> i32 {
    %c0_i32 = arith.constant 0 : i32
    %c0_i32_0 = arith.constant 0 : i32
    return %c0_i32 : i32
  }
  func.func @transform_1(%arg0: i32, %arg1: i32) -> (i32, i32, i32, i32) {
    %c0_i32 = arith.constant 0 : i32
    %c0_i32_0 = arith.constant 0 : i32
    %c0_i32_1 = arith.constant 0 : i32
    return %arg0, %arg1, %c0_i32, %c0_i32_0 : i32, i32, i32, i32
  }
  func.func @transform_2(%arg0: i32, %arg1: i32) -> (i32, i32, i32, i32) {
    %c0_i32 = arith.constant 0 : i32
    %c0_i32_0 = arith.constant 0 : i32
    %c0_i32_1 = arith.constant 0 : i32
    %c0_i32_2 = arith.constant 0 : i32
    return %arg0, %c0_i32, %c0_i32_0, %c0_i32_1 : i32, i32, i32, i32
  }
}

</mosaic_0001>

<bundles_post_ra>
// kernel: tpu_custom_call.1
= control target key start
LH: loop header
LB: loop body
LE: loop exit
PB: predicated region body
PF: predicated region fallthrough
CT: control target
= control target key end

     0   :  { %7 = vsyncpa [#allocation6], 0  ;;  %s2763_s0 = inlined_call_operand.vmem [shape: f32[50], index: 0, kind: input, shape index: {}]   ;;  %s2764_s1 = inlined_call_operand.vmem [shape: f32[2,32,20,20], index: 1, kind: input, shape index: {}]   ;;  %s2765_s2 = inlined_call_operand.hbm [shape: f32[2,1,16,16], index: 2, kind: output, shape index: {}]  }
   0x1   :  { %8 = vsyncpa [#allocation5], 0 }
   0x2   :  { %10 = vsyncpa [#allocation5 + $0x1], 0  ;;  %s1862_s9 = smov 0   ;;  %s1864_s10 = smov 0  }
   0x3   :  { %s1866_s11 = smov 0   ;;  %s1868_s12 = smov 0  }
   0x4   :  { %s1870_s13 = smov 0   ;;  %s1872_s14 = smov 0  }
   0x5   :  { %s1874_s15 = smov 0   ;;  %s1876_s16 = smov 0  }
   0x6 LB: > { %s1553_s17 = sadd.s32 4294967295, %s1836_s16   ;;  %s1554_s18 = sadd.s32 4294967294, %s1836_s16   ;;  %s1836_s16 = sphi %s1876_s16, %s16_s16   ;;  %s1832_s15 = sphi %s1874_s15, %s2831_s15   ;;  %s1828_s14 = sphi %s1872_s14, %s2830_s14   ;;  %s1824_s13 = sphi %s1870_s13, %s2829_s13   ;;  %s1820_s12 = sphi %s1868_s12, %s2828_s12   ;;  %s1816_s11 = sphi %s1866_s11, %s2827_s11   ;;  %s1812_s10 = sphi %s1864_s10, %s2826_s10   ;;  %s1808_s9 = sphi %s1862_s9, %s2825_s9  }
   0x7   : > { %s25_s19 = sadd.s32 1, %s1828_s14  ;;  %s28_s20 = sadd.s32 1, %s1832_s15 }
   0x8   : > { %p26_p0 = scmp.ge.s32.totalorder %s25_s19, 2  ;;  %s84_s21 = sadd.s32 1, %s1816_s11 }
   0x9   : > { %p94_p1 = scmp.ne.s32.totalorder %s1816_s11, %s1812_s10  ;;  %p95_p2 = scmp.eq.s32.totalorder %s1553_s17, 3 }
   0xa   : > { %s2833_s19 = smov (%p26_p0, %s25_s19), 0  ;;  %s2835_s20 = smov (!%p26_p0, %s28_s20), %s1832_s15 }
   0xb   : > { %p1912_p3 = por %p95_p2, %p94_p1  ;;  %p100_p4 = scmp.ne.s32.totalorder %s1812_s10, %s1808_s9 }
   0xc   : > { %p30_p5 = scmp.ge.s32.totalorder %s2835_s20, 2  ;;  %p101_p6 = scmp.eq.s32.totalorder %s1554_s18, 3 }
   0xd   : > { %p1555_p7 = scmp.ge.s32.totalorder %s1836_s16, 1  ;;  %p108_p8 = scmp.lt.s32.totalorder %s1836_s16, 5 }
   0xe   : > { %s2837_s20 = smov (%p30_p5, %s2835_s20), 0  ;;  %p1922_p9 = por %p101_p6, %p100_p4 }
   0xf   : > { %p109_p10 = pnand %p1555_p7, %p108_p8  ;;  %s81_s24 = ssub.s32 %s1832_s15, %s2837_s20 }
  0x10   : > { %p82_p11 = scmp.eq.s32.totalorder %s81_s24, 0  ;;  %p1636_p13 = scmp.eq.s32.totalorder %s1553_s17, 0 }
  0x11   : > { %p1628_p12 = pneg %p109_p10  ;;  %s120_s27 = sshll.u32 %s2763_s0, 4  ;;  %s121_s27 = int_to_ptr.vmem [resolvable:$true] %s120_s27 }
  0x12   : > { %s1932_s28 = scalar_select %p82_p11, %s1816_s11, %s84_s21  }
  0x13   : > { %p1629_p0 = pnand %p1636_p13, %p1628_p12  ;;  %s1838_s29 = smov [#allocation4]  }
  0x14   : > { %147 = sbr.rel (%p109_p10) target bundleno = 487 (0x1e7), region = 28 }
  0x15   : > { %1631 = dma.vmem_to_smem (!%p1629_p0), %s121_s27, 16, %s1838_s29, [#allocation6]  }
  0x19   : > { %1799 = dma.done.wait (%p1636_p13), [#allocation6], 16  }
  0x1a   : > { %1801 = vsyncadd (%p1636_p13), [#allocation6], 4294967280 }
  0x1b   : > { %154 = sfence }
  0x1c   : > { %s173_s30 = sand.u32 1, %s1812_s10   ;;  %s1561_s3 = sshll.u32 %s1820_s12, 4 }
  0x1d   : > { %s1560_s4 = sshll.u32 %s173_s30, 4  ;;  %p177_p1 = scmp.lt.s32.totalorder %s1824_s13, 1 }
  0x1e   : > { %p179_p2 = scmp.lt.s32.totalorder %s1561_s3, 31  ;;  %s1945_s25 = scalar_lea.vmem [#allocation7], %s1560_s4 }
  0x1f   : > { %s178_s5 = scalar_select %p177_p1, %s1824_s13, 1 }
  0x20   : > { %s2839_s3 = smov (!%p179_p2, %s1561_s3), 31  ;;  %p1563_p4 = scmp.ne.s32.totalorder %s1820_s12, 0 }
  0x21   : > { %s1621_s6 = smul.u32 96, %s178_s5 }
  0x22   : > { %s1620_s7 = smul.u32 3, %s2839_s3 }
  0x23   : > { %190 = sbr.rel (%p1563_p4) target bundleno = 47 (0x2f), region = 36 }
  0x24   : > { %s183_s8 = sadd.s32 %s1621_s6, %s1620_s7 }
  0x25   : > { %s1562_s17 = sshll.u32 %s183_s8, 3 }
  0x26   : > { %s1943_s24 = scalar_lea.vmem %s2764_s1, %s1562_s17 }
  0x28   : > { %vm191_vm0 = vcmask 162816   ;;  %vm194_vm1 = vcmask 158720   ;;  %v1839_v0 = vmov 0.0   ;;  %v1840_v1 = vmov -inf  }
  0x29   : > { %192 = vst.msk [vmem:[#allocation2] sm:$0xff] %vm191_vm0, %v1839_v0 }
  0x2a   : > { %193 = vst.msk [vmem:[#allocation2 + $0x8] sm:$0xff] %vm191_vm0, %v1839_v0 }
  0x2b   : > { %195 = vst.msk [vmem:[#allocation2 + $0x10] sm:$0xf] %vm194_vm1, %v1839_v0 }
  0x2c   : > { %196 = vst.msk [vmem:[#allocation3] sm:$0xff] %vm191_vm0, %v1840_v1 }
  0x2d   : > { %197 = vst.msk [vmem:[#allocation3 + $0x8] sm:$0xff] %vm191_vm0, %v1840_v1 }
  0x2e   : > { %198 = vst.msk [vmem:[#allocation3 + $0x10] sm:$0xf] %vm194_vm1, %v1840_v1 }
  0x2f PF: > { %v1949_v2 = vld [vmem:[%s1943_s24] sm:$0xff]  ;;  %v1952_v3 = vld [vmem:[%s1943_s24 + $0x18] sm:$0xff]  ;;  %v1955_v4 = vld [vmem:[%s1943_s24 + $0x30] sm:$0xff]  ;;  %vm250_vm2 = vcmask 162816   ;;  %vm313_vm3 = vcmask 158720   ;;  %p1564_p5 = scmp.ne.s32.totalorder %s1820_s12, 1 }
  0x30   : > { %v1958_v5 = vld [vmem:[%s1943_s24 + $0x48] sm:$0xff]  ;;  %v251_v6 = vsel %vm250_vm2, %v1949_v2, 0.0  ;;  %v252_v7 = vsel %vm250_vm2, %v1952_v3, 0.0  ;;  %v254_v8 = vsel %vm250_vm2, %v1955_v4, 0.0  ;;  %v1967_v9 = vld [vmem:[%s1943_s24 + $0x60] sm:$0xff]  ;;  %v1970_v10 = vld [vmem:[%s1943_s24 + $0x78] sm:$0xff] }
  0x31   : > { %v253_v11 = vadd.f32 %v252_v7, %v251_v6  ;;  %v1973_v12 = vld [vmem:[%s1943_s24 + $0x90] sm:$0xff]  ;;  %v1976_v13 = vld [vmem:[%s1943_s24 + $0xa8] sm:$0xff]  ;;  %v1979_v14 = vld [vmem:[%s1943_s24 + $0xc0] sm:$0xff]  ;;  %v256_v15 = vsel %vm250_vm2, %v1958_v5, 0.0  ;;  %v258_v22 = vsel %vm250_vm2, %v1967_v9, 0.0  ;;  %v260_v23 = vsel %vm250_vm2, %v1970_v10, 0.0 }
  0x32   : > { %v1984_v16 = vld [vmem:[%s1943_s24 + $0xd8] sm:$0xff]  ;;  %v1987_v17 = vld [vmem:[%s1943_s24 + $0xf0] sm:$0xff]  ;;  %v1990_v18 = vld [vmem:[%s1943_s24 + $0x108] sm:$0xff]  ;;  %v262_v26 = vsel %vm250_vm2, %v1973_v12, 0.0  ;;  %v264_v27 = vsel %vm250_vm2, %v1976_v13, 0.0  ;;  %v266_v34 = vsel %vm250_vm2, %v1979_v14, 0.0 }
  0x33   : > { %v255_v19 = vadd.f32 %v254_v8, %v253_v11  ;;  %v1993_v20 = vld [vmem:[%s1943_s24 + $0x120] sm:$0xff]  ;;  %v1996_v21 = vld [vmem:[%s1943_s24 + $0x138] sm:$0xff]  ;;  %v2003_v24 = vld [vmem:[%s1943_s24 + $0x8] sm:$0xff]  ;;  %v268_v35 = vsel %vm250_vm2, %v1984_v16, 0.0  ;;  %v2036_v39 = vsel %vm250_vm2, %v1987_v17, 0.0  ;;  %v2040_v40 = vsel %vm250_vm2, %v1990_v18, 0.0 }
  0x34   : > { %v2010_v28 = vld [vmem:[%s1943_s24 + $0x20] sm:$0xff]  ;;  %v2013_v29 = vld [vmem:[%s1943_s24 + $0x38] sm:$0xff]  ;;  %v2016_v30 = vld [vmem:[%s1943_s24 + $0x50] sm:$0xff]  ;;  %v282_v31 = vsel %vm250_vm2, %v2003_v24, 0.0  ;;  %v2053_v45 = vsel %vm250_vm2, %v1993_v20, 0.0  ;;  %v2057_v46 = vsel %vm250_vm2, %v1996_v21, 0.0 }
  0x35   : > { %v257_v25 = vadd.f32 %v256_v15, %v255_v19  ;;  %v2021_v32 = vld [vmem:[%s1943_s24 + $0x150] sm:$0xff]  ;;  %v2024_v33 = vld [vmem:[%s1943_s24 + $0x168] sm:$0xff]  ;;  %v283_v36 = vsel %vm250_vm2, %v2010_v28, 0.0  ;;  %v285_v37 = vsel %vm250_vm2, %v2013_v29, 0.0  ;;  %v2046_v42 = vld [vmem:[%s1943_s24 + $0x80] sm:$0xff]  ;;  %v287_v50 = vsel %vm250_vm2, %v2016_v30, 0.0 }
  0x36   : > { %v2043_v41 = vld [vmem:[%s1943_s24 + $0x68] sm:$0xff]  ;;  %v2049_v43 = vld [vmem:[%s1943_s24 + $0x98] sm:$0xff]  ;;  %v284_v44 = vadd.f32 %v283_v36, %v282_v31  ;;  %v2060_v47 = vld [vmem:[%s1943_s24 + $0xb0] sm:$0xff]  ;;  %v2072_v52 = vsel %vm250_vm2, %v2021_v32, 0.0  ;;  %v2076_v53 = vsel %vm250_vm2, %v2024_v33, 0.0  ;;  %v291_v61 = vsel %vm250_vm2, %v2046_v42, 0.0 }
  0x37   : > { %v259_v38 = vadd.f32 %v258_v22, %v257_v25  ;;  %v2063_v48 = vld [vmem:[%s1943_s24 + $0xc8] sm:$0xff]  ;;  %v2066_v49 = vld [vmem:[%s1943_s24 + $0xe0] sm:$0xff]  ;;  %v2079_v54 = vld [vmem:[%s1943_s24 + $0xf8] sm:$0xff]  ;;  %v289_v60 = vsel %vm250_vm2, %v2043_v41, 0.0  ;;  %v293_v62 = vsel %vm250_vm2, %v2049_v43, 0.0  ;;  %v2101_v63 = vsel %vm250_vm2, %v1949_v2, -inf }
  0x38   : > { %2787 = vst [vmem:[#allocation10_spill] sm:$0xff] %v2066_v49  ;;  %v2082_v55 = vld [vmem:[%s1943_s24 + $0x110] sm:$0xff]  ;;  %v2085_v56 = vld [vmem:[%s1943_s24 + $0x128] sm:$0xff]  ;;  %v286_v57 = vadd.f32 %v285_v37, %v284_v44  ;;  %v2088_v58 = vld [vmem:[%s1943_s24 + $0x140] sm:$0xff]  ;;  %v295_v6 = vsel %vm250_vm2, %v2060_v47, 0.0  ;;  %v297_v7 = vsel %vm250_vm2, %v2063_v48, 0.0 }
  0x39   : > { %v261_v51 = vadd.f32 %v260_v23, %v259_v38  ;;  %2788 = vst [vmem:[#allocation11_spill] sm:$0xff] %v2079_v54  ;;  %v2091_v59 = vld [vmem:[%s1943_s24 + $0x158] sm:$0xff]  ;;  %v2108_v8 = vld [vmem:[%s1943_s24 + $0x170] sm:$0xff]  ;;  %v299_v11 = vsel %vm250_vm2, %v2066_v49, 0.0  ;;  %v301_v2 = vsel %vm250_vm2, %v2079_v54, 0.0  ;;  %v2116_v15 = vsel %vm250_vm2, %v2082_v55, 0.0 }
  0x3a   : > { %2789 = vst [vmem:[#allocation12_spill] sm:$0xff] %v2082_v55  ;;  %v288_v1 = vadd.f32 %v287_v50, %v286_v57  ;;  %v2120_v19 = vsel %vm250_vm2, %v2085_v56, 0.0  ;;  %v2124_v25 = vsel %vm250_vm2, %v2088_v58, 0.0  ;;  %v2131_v31 = vld [vmem:[%s1943_s24 + $0x10] sm:$0xf]  ;;  %v355_v44 = vsel %vm250_vm2, %v1952_v3, -inf }
  0x3b   : > { %2790 = vst [vmem:[#allocation13_spill] sm:$0xff] %v2085_v56  ;;  %v263_v0 = vadd.f32 %v262_v26, %v261_v51  ;;  %v2128_v26 = vsel %vm250_vm2, %v2091_v59, 0.0  ;;  %v2134_v36 = vld [vmem:[%s1943_s24 + $0x28] sm:$0xf]  ;;  %v2141_v37 = vld [vmem:[%s1943_s24 + $0x40] sm:$0xf] }
  0x3c   : > { %2791 = vst [vmem:[#allocation14_spill] sm:$0xff] %v2088_v58  ;;  %v290_v23 = vadd.f32 %v289_v60, %v288_v1  ;;  %v2144_v38 = vld [vmem:[%s1943_s24 + $0x58] sm:$0xf]  ;;  %v2149_v57 = vld [vmem:[%s1943_s24 + $0x70] sm:$0xf]  ;;  %v317_v54 = vsel %vm313_vm3, %v2141_v37, 0.0 }
  0x3d   : > { %2792 = vst [vmem:[#allocation15_spill] sm:$0xff] %v2091_v59  ;;  %v265_v22 = vadd.f32 %v264_v27, %v263_v0  ;;  %v2138_v27 = vsel %vm250_vm2, %v2108_v8, 0.0  ;;  %v2152_v60 = vld [vmem:[%s1943_s24 + $0x88] sm:$0xf]  ;;  %v2155_v0 = vld [vmem:[%s1943_s24 + $0xa0] sm:$0xf] }
  0x3e   : > { %2793 = vst [vmem:[#allocation16_spill] sm:$0xff] %v2108_v8  ;;  %v292_v51 = vadd.f32 %v291_v61, %v290_v23  ;;  %v2158_v1 = vld [vmem:[%s1943_s24 + $0xb8] sm:$0xf]  ;;  %v2161_v8 = vld [vmem:[%s1943_s24 + $0xd0] sm:$0xf]  ;;  %v315_v61 = vsel %vm313_vm3, %v2134_v36, 0.0 }
  0x3f   : > { %2794 = vst [vmem:[#allocation17_spill] sm:$0xff] %v2131_v31  ;;  %v267_v50 = vadd.f32 %v266_v34, %v265_v22  ;;  %v2164_v59 = vld [vmem:[%s1943_s24 + $0xe8] sm:$0xf]  ;;  %v2167_v55 = vld [vmem:[%s1943_s24 + $0x100] sm:$0xf]  ;;  %v314_v34 = vsel %vm313_vm3, %v2131_v31, 0.0 }
  0x40   : > { %2795 = vst [vmem:[#allocation18_spill] sm:$0xff] %v2141_v37  ;;  %v294_v56 = vadd.f32 %v293_v62, %v292_v51  ;;  %v2170_v3 = vld [vmem:[%s1943_s24 + $0x118] sm:$0xf]  ;;  %v2177_v22 = vld [vmem:[%s1943_s24 + $0x130] sm:$0xf]  ;;  %v316_v23 = vadd.f32 %v315_v61, %v314_v34  ;;  %v321_v62 = vsel %vm313_vm3, %v2149_v57, 0.0 }
  0x41   : > { %2796 = vst [vmem:[#allocation19_spill] sm:$0xff] %v2144_v38  ;;  %v269_v58 = vadd.f32 %v268_v35, %v267_v50  ;;  %v319_v35 = vsel %vm313_vm3, %v2144_v38, 0.0  ;;  %v2187_v31 = vld [vmem:[%s1943_s24 + $0x148] sm:$0xf]  ;;  %v2190_v49 = vld [vmem:[%s1943_s24 + $0x160] sm:$0xf] }
  0x42   : > { %2797 = vst [vmem:[#allocation20_spill] sm:$0xff] %v2149_v57  ;;  %v296_v51 = vadd.f32 %v295_v6, %v294_v56  ;;  %v323_v34 = vsel %vm313_vm3, %v2152_v60, 0.0  ;;  %v325_v61 = vsel %vm313_vm3, %v2155_v0, 0.0  ;;  %v318_v37 = vadd.f32 %v317_v54, %v316_v23  ;;  %v2210_v54 = vld [vmem:[%s1943_s24 + $0x178] sm:$0xf]  ;;  %s1567_s26 = sld [smem:[#allocation4 + $0x1a]] (!%p1564_p5) }
  0x43   : > { %2798 = vst [vmem:[#allocation21_spill] sm:$0xff] %v2152_v60  ;;  %v271_v50 = vadd.f32 %v2036_v39, %v269_v58  ;;  %v327_v38 = vsel %vm313_vm3, %v2158_v1, 0.0  ;;  %v329_v57 = vsel %vm313_vm3, %v2161_v8, 0.0  ;;  %v331_v39 = vsel %vm313_vm3, %v2164_v59, 0.0  ;;  %s1566_s27 = sld [smem:[#allocation4 + $0x1]] (!%p1564_p5)  ;;  %s1841_s3 = smov (!%p1564_p5), 127  }
  0x44   : > { %2799 = vst [vmem:[#allocation22_spill] sm:$0xff] %v2158_v1  ;;  %v298_v58 = vadd.f32 %v297_v7, %v296_v51  ;;  %v333_v6 = vsel %vm313_vm3, %v2167_v55, 0.0  ;;  %v2207_v60 = vsel %vm313_vm3, %v2170_v3, 0.0  ;;  %v320_v23 = vadd.f32 %v319_v35, %v318_v37  ;;  %s1568_s29 = sld [smem:[#allocation4 + $0x2]] (!%p1564_p5)  ;;  %s1842_s4 = smov (!%p1564_p5), 126  }
  0x45   : > { %2800 = vst [vmem:[#allocation23_spill] sm:$0xff] %v2164_v59  ;;  %v273_v56 = vadd.f32 %v2040_v40, %v271_v50  ;;  %v2214_v1 = vsel %vm313_vm3, %v2177_v22, 0.0  ;;  %v2218_v59 = vsel %vm313_vm3, %v2187_v31, 0.0  ;;  %v2222_v40 = vsel %vm313_vm3, %v2190_v49, 0.0  ;;  %s1569_s12 = sld [smem:[#allocation4 + $0x1b]] (!%p1564_p5)  ;;  %s1843_s17 = smov (!%p1564_p5), 125  }
  0x46   : > { %2801 = vst [vmem:[#allocation24_spill] sm:$0xff] %v2170_v3  ;;  %v300_v50 = vadd.f32 %v299_v11, %v298_v58  ;;  %v2227_v51 = vsel %vm313_vm3, %v2210_v54, 0.0  ;;  %v356_v37 = vsel %vm250_vm2, %v1955_v4, -inf  ;;  %v322_v35 = vadd.f32 %v321_v62, %v320_v23  ;;  %s1570_s5 = sld [smem:[#allocation4 + $0x3]] (!%p1564_p5)  ;;  %s1844_s24 = smov (!%p1564_p5), 124  }
  0x47   : > { %2802 = vst [vmem:[#allocation25_spill] sm:$0xff] %v2177_v22  ;;  %v275_v7 = vadd.f32 %v2053_v45, %v273_v56  ;;  %v357_v22 = vmax.f32 %v2101_v63, %v356_v37  ;;  %v362_v56 = vsel %vm250_vm2, %v1970_v10, -inf  ;;  %v364_v4 = vsel %vm250_vm2, %v1973_v12, -inf  ;;  %s1571_s6 = sld [smem:[#allocation4 + $0x1c]] (!%p1564_p5) }
  0x48   : > { %2803 = vst [vmem:[#allocation26_spill] sm:$0xff] %v2187_v31  ;;  %v358_v31 = vsel %vm250_vm2, %v1958_v5, -inf  ;;  %v302_v45 = vadd.f32 %v301_v2, %v300_v50  ;;  %v324_v58 = vadd.f32 %v323_v34, %v322_v35  ;;  %v366_v63 = vsel %vm250_vm2, %v1976_v13, -inf  ;;  %v247_v2 = vld [vmem:[#allocation2] sm:$0xff]  ;;  %s1572_s7 = sld [smem:[#allocation4 + $0x4]] (!%p1564_p5) }
  0x49   : > { %2804 = vst [vmem:[#allocation27_spill] sm:$0xff] %v2190_v49  ;;  %v360_v49 = vsel %vm250_vm2, %v1967_v9, -inf  ;;  %v277_v3 = vadd.f32 %v2057_v46, %v275_v7  ;;  %v359_v11 = vmax.f32 %v355_v44, %v358_v31  ;;  %v368_v46 = vsel %vm250_vm2, %v1979_v14, -inf  ;;  %s1576_s8 = sld [smem:[#allocation4 + $0x6]] (!%p1564_p5) }
  0x4a   : > { %2805 = vst [vmem:[#allocation28_spill] sm:$0xff] %v2210_v54  ;;  %v361_v54 = vmax.f32 %v357_v22, %v360_v49  ;;  %v304_v62 = vadd.f32 %v2116_v15, %v302_v45  ;;  %v326_v31 = vadd.f32 %v325_v61, %v324_v58  ;;  %v370_v10 = vsel %vm250_vm2, %v1984_v16, -inf  ;;  %s1573_s18 = sld [smem:[#allocation4 + $0x1d]] (!%p1564_p5) }
  0x4b   : > { %v279_v5 = vadd.f32 %v2072_v52, %v277_v3  ;;  %v363_v9 = vmax.f32 %v359_v11, %v362_v56  ;;  %v372_v12 = vsel %vm250_vm2, %v1987_v17, -inf  ;;  %v374_v15 = vsel %vm250_vm2, %v1990_v18, -inf  ;;  %s1577_s21 = sld [smem:[#allocation4 + $0x1f]] (!%p1564_p5) }
  0x4c   : > { %v365_v44 = vmax.f32 %v361_v54, %v364_v4  ;;  %v306_v13 = vadd.f32 %v2120_v19, %v304_v62  ;;  %v328_v3 = vadd.f32 %v327_v38, %v326_v31  ;;  %v376_v14 = vsel %vm250_vm2, %v1993_v20, -inf  ;;  %v2806_v62 = vld [vmem:[#allocation10_spill] sm:$0xff]  ;;  %v2808_v31 = vld [vmem:[#allocation12_spill] sm:$0xff] }
  0x4d   : > { %v281_v49 = vadd.f32 %v2076_v53, %v279_v5  ;;  %v367_v52 = vmax.f32 %v363_v9, %v366_v63  ;;  %v378_v34 = vsel %vm250_vm2, %v1996_v21, -inf  ;;  %v380_v53 = vsel %vm250_vm2, %v2021_v32, -inf  ;;  %v248_v32 = vld [vmem:[#allocation2 + $0x8] sm:$0xff] }
  0x4e   : > { %v369_v22 = vmax.f32 %v365_v44, %v368_v46  ;;  %v308_v61 = vadd.f32 %v2124_v25, %v306_v13  ;;  %v330_v19 = vadd.f32 %v329_v57, %v328_v3  ;;  %v382_v18 = vsel %vm250_vm2, %v2024_v33, -inf  ;;  %v2807_v46 = vld [vmem:[#allocation11_spill] sm:$0xff] }
  0x4f   : > { %v345_v16 = vadd.f32 %v281_v49, %v247_v2  ;;  %v371_v17 = vmax.f32 %v367_v52, %v370_v10  ;;  %v385_v38 = vsel %vm250_vm2, %v2003_v24, -inf  ;;  %v386_v25 = vsel %vm250_vm2, %v2010_v28, -inf  ;;  %v2810_v49 = vld [vmem:[#allocation14_spill] sm:$0xff]  ;;  %v2811_v52 = vld [vmem:[#allocation15_spill] sm:$0xff] }
  0x50   : > { %v373_v54 = vmax.f32 %v369_v22, %v372_v12  ;;  %v310_v20 = vadd.f32 %v2128_v26, %v308_v61  ;;  %v387_v23 = vsel %vm250_vm2, %v2013_v29, -inf  ;;  %v332_v57 = vadd.f32 %v331_v39, %v330_v19 }
  0x51   : > { %348 = vst.msk [vmem:[#allocation2] sm:$0xff] %vm250_vm2, %v345_v16  ;;  %v375_v21 = vmax.f32 %v371_v17, %v374_v15  ;;  %v388_v50 = vmax.f32 %v385_v38, %v387_v23  ;;  %v389_v33 = vsel %vm250_vm2, %v2016_v30, -inf  ;;  %v391_v26 = vsel %vm250_vm2, %v2043_v41, -inf }
  0x52   : > { %v377_v7 = vmax.f32 %v373_v54, %v376_v14  ;;  %v312_v24 = vadd.f32 %v2138_v27, %v310_v20  ;;  %v390_v35 = vmax.f32 %v386_v25, %v389_v33  ;;  %v334_v45 = vadd.f32 %v333_v6, %v332_v57  ;;  %v351_v27 = vld [vmem:[#allocation3] sm:$0xff]  ;;  %v2812_v14 = vld [vmem:[#allocation16_spill] sm:$0xff]  ;;  %v249_v25 = vld [vmem:[#allocation2 + $0x10] sm:$0xf] }
  0x53   : > { %v379_v37 = vmax.f32 %v375_v21, %v378_v34  ;;  %v392_v28 = vmax.f32 %v388_v50, %v391_v26  ;;  %v393_v29 = vsel %vm250_vm2, %v2046_v42, -inf  ;;  %v395_v4 = vsel %vm250_vm2, %v2049_v43, -inf  ;;  %v2813_v34 = vld [vmem:[#allocation17_spill] sm:$0xff]  ;;  %v2815_v54 = vld [vmem:[#allocation19_spill] sm:$0xff]  ;;  %v2818_v26 = vld [vmem:[#allocation22_spill] sm:$0xff] }
  0x54   : > { %v381_v11 = vmax.f32 %v377_v7, %v380_v53  ;;  %v346_v56 = vadd.f32 %v312_v24, %v248_v32  ;;  %v394_v58 = vmax.f32 %v390_v35, %v393_v29  ;;  %v336_v30 = vadd.f32 %v2207_v60, %v334_v45  ;;  %v2814_v53 = vld [vmem:[#allocation18_spill] sm:$0xff]  ;;  %v2816_v32 = vld [vmem:[#allocation20_spill] sm:$0xff]  ;;  %v2817_v7 = vld [vmem:[#allocation21_spill] sm:$0xff] }
  0x55   : > { %v383_v39 = vmax.f32 %v379_v37, %v382_v18  ;;  %v396_v63 = vmax.f32 %v392_v28, %v395_v4  ;;  %v397_v5 = vsel %vm250_vm2, %v2060_v47, -inf  ;;  %v399_v41 = vsel %vm250_vm2, %v2063_v48, -inf  ;;  %v2809_v47 = vld [vmem:[#allocation13_spill] sm:$0xff]  ;;  %v2819_v28 = vld [vmem:[#allocation23_spill] sm:$0xff] }
  0x56   : > { %349 = vst.msk [vmem:[#allocation2 + $0x8] sm:$0xff] %vm250_vm2, %v346_v56  ;;  %v398_v42 = vmax.f32 %v394_v58, %v397_v5  ;;  %v401_v9 = vsel %vm250_vm2, %v2806_v62, -inf  ;;  %v403_v43 = vsel %vm250_vm2, %v2807_v46, -inf  ;;  %v338_v60 = vadd.f32 %v2214_v1, %v336_v30  ;;  %v2820_v30 = vld [vmem:[#allocation24_spill] sm:$0xff] }
  0x57   : > { %v384_v6 = vmax.f32 %v381_v11, %v383_v39  ;;  %v400_v2 = vmax.f32 %v396_v63, %v399_v41  ;;  %v405_v44 = vsel %vm250_vm2, %v2808_v31, -inf  ;;  %v407_v10 = vsel %vm250_vm2, %v2809_v47, -inf  ;;  %v352_v39 = vld [vmem:[#allocation3 + $0x8] sm:$0xff] }
  0x58   : > { %v402_v12 = vmax.f32 %v398_v42, %v401_v9  ;;  %v409_v13 = vsel %vm250_vm2, %v2810_v49, -inf  ;;  %v411_v15 = vsel %vm250_vm2, %v2811_v52, -inf  ;;  %v340_v3 = vadd.f32 %v2218_v59, %v338_v60  ;;  %v2822_v42 = vld [vmem:[#allocation26_spill] sm:$0xff]  ;;  %v2824_v60 = vld [vmem:[#allocation28_spill] sm:$0xff] }
  0x59   : > { %v447_v48 = vmax.f32 %v351_v27, %v384_v6  ;;  %v404_v22 = vmax.f32 %v400_v2, %v403_v43  ;;  %v413_v1 = vsel %vm250_vm2, %v2812_v14, -inf  ;;  %v416_v16 = vsel %vm313_vm3, %v2813_v34, -inf  ;;  %v2823_v43 = vld [vmem:[#allocation27_spill] sm:$0xff] }
  0x5a   : > { %v406_v61 = vmax.f32 %v402_v12, %v405_v44  ;;  %v417_v17 = vsel %vm313_vm3, %v2134_v36, -inf  ;;  %v418_v19 = vsel %vm313_vm3, %v2814_v53, -inf  ;;  %v420_v18 = vsel %vm313_vm3, %v2815_v54, -inf }
  0x5b   : > { %450 = vst.msk [vmem:[#allocation3] sm:$0xff] %vm250_vm2, %v447_v48  ;;  %v342_v59 = vadd.f32 %v2222_v40, %v340_v3  ;;  %v408_v38 = vmax.f32 %v404_v22, %v407_v10  ;;  %v419_v20 = vmax.f32 %v416_v16, %v418_v19  ;;  %v421_v21 = vmax.f32 %v417_v17, %v420_v18  ;;  %v353_v48 = vld [vmem:[#allocation3 + $0x10] sm:$0xf] }
  0x5c   : > { %v410_v23 = vmax.f32 %v406_v61, %v409_v13  ;;  %v422_v57 = vsel %vm313_vm3, %v2816_v32, -inf  ;;  %v424_v50 = vsel %vm313_vm3, %v2817_v7, -inf  ;;  %v426_v36 = vsel %vm313_vm3, %v2155_v0, -inf }
  0x5d   : > { %v344_v33 = vadd.f32 %v2227_v51, %v342_v59  ;;  %v412_v24 = vmax.f32 %v408_v38, %v411_v15  ;;  %v423_v37 = vmax.f32 %v419_v20, %v422_v57  ;;  %v425_v35 = vmax.f32 %v421_v21, %v424_v50 }
  0x5e   : > { %v414_v40 = vmax.f32 %v410_v23, %v413_v1  ;;  %v428_v45 = vsel %vm313_vm3, %v2818_v26, -inf  ;;  %v430_v11 = vsel %vm313_vm3, %v2161_v8, -inf  ;;  %v432_v29 = vsel %vm313_vm3, %v2819_v28, -inf  ;;  %v2821_v8 = vld [vmem:[#allocation25_spill] sm:$0xff] }
  0x5f   : > { %v347_v56 = vadd.f32 %v344_v33, %v249_v25  ;;  %v427_v58 = vmax.f32 %v423_v37, %v426_v36  ;;  %v429_v4 = vmax.f32 %v425_v35, %v428_v45  ;;  %v434_v51 = vsel %vm313_vm3, %v2167_v55, -inf }
  0x60   : > { %v415_v0 = vmax.f32 %v412_v24, %v414_v40  ;;  %v436_v27 = vsel %vm313_vm3, %v2820_v30, -inf  ;;  %v438_v6 = vsel %vm313_vm3, %v2821_v8, -inf  ;;  %v440_v62 = vsel %vm313_vm3, %v2822_v42, -inf }
  0x61   : > { %350 = vst.msk [vmem:[#allocation2 + $0x10] sm:$0xf] %vm313_vm3, %v347_v56  ;;  %v431_v63 = vmax.f32 %v427_v58, %v430_v11  ;;  %v433_v5 = vmax.f32 %v429_v4, %v432_v29  ;;  %v442_v55 = vsel %vm313_vm3, %v2823_v43, -inf  ;;  %v444_v2 = vsel %vm313_vm3, %v2824_v60, -inf }
  0x62   : > { %v448_v41 = vmax.f32 %v352_v39, %v415_v0 }
  0x63   : > { %v435_v9 = vmax.f32 %v431_v63, %v434_v51  ;;  %v437_v46 = vmax.f32 %v433_v5, %v436_v27 }
  0x64   : > { %451 = vst.msk [vmem:[#allocation3 + $0x8] sm:$0xff] %vm250_vm2, %v448_v41 }
  0x65   : > { %v439_v31 = vmax.f32 %v435_v9, %v438_v6  ;;  %v441_v44 = vmax.f32 %v437_v46, %v440_v62 }
  0x67   : > { %v443_v47 = vmax.f32 %v439_v31, %v442_v55  ;;  %v445_v10 = vmax.f32 %v441_v44, %v444_v2 }
  0x69   : > { %v446_v12 = vmax.f32 %v443_v47, %v445_v10  ;;  %456 = sbr.rel (%p1564_p5) target bundleno = 471 (0x1d7), region = 40 }
  0x6b   : > { %v449_v49 = vmax.f32 %v353_v48, %v446_v12 }
  0x6d   : > { %452 = vst.msk [vmem:[#allocation3 + $0x10] sm:$0xf] %vm313_vm3, %v449_v49 }
  0x6e   : > { %v457_v13 = vld [vmem:[#allocation2] sm:$0xff]  ;;  %v2342_v52 = vld [vmem:[#allocation3] sm:$0xff]  ;;  %v493_v3 = vstv %s1567_s26  ;;  %v458_v14 = vld [vmem:[#allocation2 + $0x8] sm:$0xff]  ;;  %v479_v1 = vstv %s1566_s27  ;;  %v507_v17 = vstv %s1568_s29  ;;  %v521_v18 = vstv %s1569_s12  ;;  %s1578_s26 = sld [smem:[#allocation4 + $0x7]] }
  0x6f   : > { %v2344_v15 = vmul.f32 0.03125, %v457_v13  ;;  %v494_v22 = vmul.f32 %v493_v3, %v2342_v52  ;;  %v2349_v16 = vld [vmem:[#allocation3 + $0x8] sm:$0xff]  ;;  %v2351_v61 = vmul.f32 0.03125, %v458_v14  ;;  %v522_v20 = vmul.f32 %v521_v18, %v2342_v52  ;;  %v459_v40 = vld [vmem:[#allocation2 + $0x10] sm:$0xf]  ;;  %s1579_s27 = sld [smem:[#allocation4 + $0x20]] }
  0x70   : > { %v495_v19 = vmul.f32 %v493_v3, %v2349_v16  ;;  %v523_v38 = vmul.f32 %v521_v18, %v2349_v16  ;;  %v535_v21 = vstv %s1570_s5  ;;  %v549_v25 = vstv %s1571_s6  ;;  %s1580_s29 = sld [smem:[#allocation4 + $0x8]] }
  0x71   : > { %v480_v34 = vmul.f32 %v479_v1, %v2344_v15  ;;  %498 = vrot.lane.b32.xlu1 %v494_v22, %s1841_s3  ;;  %v508_v53 = vmul.f32 %v507_v17, %v2344_v15  ;;  %v481_v54 = vmul.f32 %v479_v1, %v2351_v61  ;;  %v509_v59 = vmul.f32 %v507_v17, %v2351_v61  ;;  %s1581_s12 = sld [smem:[#allocation4 + $0x21]] }
  0x72   : > { %v536_v23 = vmul.f32 %v535_v21, %v2344_v15  ;;  %v550_v32 = vmul.f32 %v549_v25, %v2342_v52  ;;  %v537_v57 = vmul.f32 %v535_v21, %v2351_v61  ;;  %v563_v7 = vstv %s1572_s7  ;;  %s1582_s5 = sld [smem:[#allocation4 + $0x9]] }
  0x73   : > { %484 = vrot.lane.b32.xlu0 %v480_v34, %s1841_s3  ;;  %512 = vrot.lane.b32.xlu2 %v508_v53, %s1842_s4  ;;  %v551_v50 = vmul.f32 %v549_v25, %v2349_v16  ;;  %v626_v36 = vstv %s1576_s8  ;;  %v565_v33 = vmul.f32 %v563_v7, %v2351_v61  ;;  %v564_v24 = vmul.f32 %v563_v7, %v2344_v15  ;;  %s1583_s6 = sld [smem:[#allocation4 + $0x22]] }
  0x74   : > { %v627_v37 = vmul.f32 %v626_v36, %v2344_v15  ;;  %v628_v35 = vmul.f32 %v626_v36, %v2351_v61  ;;  %v577_v26 = vstv %s1573_s18  ;;  %v2379_v45 = vmul.f32 0.03125, %v459_v40  ;;  %v2383_v56 = vld [vmem:[#allocation3 + $0x10] sm:$0xf]  ;;  %s1586_s7 = sld [smem:[#allocation4 + $0xb]] }
  0x75   : > { %v578_v29 = vmul.f32 %v577_v26, %v2342_v52  ;;  %vm598_vm4 = vcmask 1046528   ;;  %v647_v39 = vstv %s1577_s21  ;;  %v579_v0 = vmul.f32 %v577_v26, %v2349_v16  ;;  %s1587_s8 = sld [smem:[#allocation4 + $0x24]] }
  0x76   : > { %v633_v11 = vrot.slane %v627_v37, 1  ;;  %v634_v28 = vrot.slane %v628_v35, 1  ;;  %v629_v58 = vmul.f32 %v626_v36, %v2379_v45  ;;  %v649_v51 = vmul.f32 %v647_v39, %v2349_v16  ;;  %s1588_s18 = sld [smem:[#allocation4 + $0xc]] }
  0x77   : > { %v650_v30 = vmul.f32 %v647_v39, %v2383_v56  ;;  %v648_v27 = vmul.f32 %v647_v39, %v2342_v52  ;;  %v668_v8 = vstv %s1578_s26  ;;  %v689_v42 = vstv %s1579_s27  ;;  %s1589_s21 = sld [smem:[#allocation4 + $0x25]] }
  0x78   : > { %v635_v4 = vsel %vm598_vm4, %v633_v11, %v634_v28  ;;  %v636_v63 = vrot.slane %v629_v58, 1  ;;  %v655_v5 = vrot.slane %v649_v51, 1  ;;  %v669_v9 = vmul.f32 %v668_v8, %v2344_v15  ;;  %s1590_s26 = sld [smem:[#allocation4 + $0xd]] }
  0x79   : > { %500 = vrot.lane.b32.xlu1 %v495_v19, %s1841_s3  ;;  %v657_v41 = vrot.slane %v650_v30, 1  ;;  %v654_v6 = vrot.slane %v648_v27, 1  ;;  %v670_v46 = vmul.f32 %v668_v8, %v2351_v61  ;;  %v690_v55 = vmul.f32 %v689_v42, %v2342_v52  ;;  %s1591_s27 = sld [smem:[#allocation4 + $0x26]] }
  0x7a   : > { %v637_v62 = vsel %vm598_vm4, %v634_v28, %v636_v63  ;;  %v691_v60 = vmul.f32 %v689_v42, %v2349_v16  ;;  %v671_v31 = vmul.f32 %v668_v8, %v2379_v45  ;;  %v675_v44 = vrot.slane %v669_v9, 1 }
  0x7b   : > { %486 = vrot.lane.b32.xlu0 %v481_v54, %s1841_s3  ;;  %514 = vrot.lane.b32.xlu2 %v509_v59, %s1842_s4  ;;  %v658_v43 = vsel %vm598_vm4, %v655_v5, %v657_v41  ;;  %v656_v2 = vsel %vm598_vm4, %v654_v6, %v655_v5  ;;  %v676_v47 = vrot.slane %v670_v46, 1  ;;  %v696_v10 = vrot.slane %v690_v55, 1 }
  0x7c   : > { %v697_v48 = vrot.slane %v691_v60, 1  ;;  %v678_v12 = vrot.slane %v671_v31, 1  ;;  %v710_v49 = vstv %s1580_s29  ;;  %v692_v3 = vmul.f32 %v689_v42, %v2383_v56  ;;  %s2466_s29 = sld [smem:[#allocation4]] }
  0x7d   : > { %v677_v13 = vsel %vm598_vm4, %v675_v44, %v676_v47  ;;  %v712_v14 = vmul.f32 %v710_v49, %v2351_v61  ;;  %v713_v1 = vmul.f32 %v710_v49, %v2379_v45  ;;  %v711_v17 = vmul.f32 %v710_v49, %v2344_v15 }
  0x7e   : > { %v698_v22 = vsel %vm598_vm4, %v696_v10, %v697_v48  ;;  %v679_v34 = vsel %vm598_vm4, %v676_v47, %v678_v12  ;;  %v699_v53 = vrot.slane %v692_v3, 1  ;;  %v731_v18 = vstv %s1581_s12  ;;  %s2471_s12 = sld [smem:[#allocation4 + $0x19]] }
  0x7f   : > { %v718_v19 = vrot.slane %v712_v14, 1  ;;  %v720_v54 = vrot.slane %v713_v1, 1  ;;  %v717_v59 = vrot.slane %v711_v17, 1  ;;  %v732_v21 = vmul.f32 %v731_v18, %v2342_v52 }
  0x80   : > { %v733_v25 = vmul.f32 %v731_v18, %v2349_v16  ;;  %v773_v40 = vstv %s1583_s6  ;;  %v829_v27 = vstv %s1586_s7  ;;  %v850_v5 = vstv %s1587_s8  ;;  %s1593_s6 = sld [smem:[#allocation4 + $0x27]] }
  0x81   : > { %528 = vrot.lane.b32.xlu1 %v523_v38, %s1842_s4  ;;  %v752_v38 = vstv %s1582_s5  ;;  %v719_v7 = vsel %vm598_vm4, %v717_v59, %v718_v19  ;;  %v738_v36 = vrot.slane %v732_v21, 1  ;;  %v776_v39 = vmul.f32 %v773_v40, %v2383_v56  ;;  %s1592_s5 = sld [smem:[#allocation4 + $0xe]] }
  0x82   : > { %v755_v11 = vmul.f32 %v752_v38, %v2379_v45  ;;  %v830_v8 = vmul.f32 %v829_v27, %v2344_v15  ;;  %v831_v6 = vmul.f32 %v829_v27, %v2351_v61  ;;  %v852_v9 = vmul.f32 %v850_v5, %v2349_v16  ;;  %s1596_s7 = sld [smem:[#allocation4 + $0x10]] }
  0x83   : > { %526 = vrot.lane.b32.xlu0 %v522_v20, %s1842_s4  ;;  %540 = vrot.lane.b32.xlu2 %v536_v23, %s1843_s17  ;;  %v700_v20 = vsel %vm598_vm4, %v697_v48, %v699_v53  ;;  %v721_v23 = vsel %vm598_vm4, %v718_v19, %v720_v54  ;;  %v783_v30 = vrot.slane %v776_v39, 1  ;;  %vm801_vm5 = vcmask 1045504   ;;  %s1597_s8 = sld [smem:[#allocation4 + $0x29]] }
  0x84   : > { %v836_v55 = vrot.slane %v830_v8, 2  ;;  %v837_v60 = vrot.slane %v831_v6, 2  ;;  %v858_v31 = vrot.slane %v852_v9, 2  ;;  %v871_v47 = vstv %s1588_s18  ;;  %s1598_s18 = sld [smem:[#allocation4 + $0x11]] }
  0x85   : > { %v853_v48 = vmul.f32 %v850_v5, %v2383_v56  ;;  %v873_v49 = vmul.f32 %v871_v47, %v2351_v61  ;;  %v892_v17 = vstv %s1589_s21  ;;  %v913_v19 = vstv %s1590_s26  ;;  %s1599_s21 = sld [smem:[#allocation4 + $0x2a]] }
  0x86   : > { %v838_v10 = vsel %vm801_vm5, %v836_v55, %v837_v60  ;;  %v894_v59 = vmul.f32 %v892_v17, %v2349_v16  ;;  %v915_v21 = vmul.f32 %v913_v19, %v2351_v61  ;;  %vm1004_vm6 = vcmask 1044480   ;;  %s1574_s26 = sld [smem:[#allocation4 + $0x5]] }
  0x87   : > { %v860_v14 = vrot.slane %v853_v48, 2  ;;  %v879_v1 = vrot.slane %v873_v49, 2  ;;  %vm1207_vm7 = vcmask 1043456   ;;  %vm1440_vm11 = vcmask 130048  }
  0x89   : > { %554 = vrot.lane.b32.xlu1 %v550_v32, %s1843_s17  ;;  %v753_v32 = vmul.f32 %v752_v38, %v2344_v15  ;;  %v861_v54 = vsel %vm801_vm5, %v858_v31, %v860_v14 }
  0x8b   : > { %542 = vrot.lane.b32.xlu0 %v537_v57, %s1843_s17  ;;  %556 = vrot.lane.b32.xlu2 %v551_v50, %s1843_s17  ;;  %v754_v57 = vmul.f32 %v752_v38, %v2351_v61  ;;  %v734_v50 = vmul.f32 %v731_v18, %v2383_v56  ;;  %v893_v18 = vmul.f32 %v892_v17, %v2342_v52 }
  0x8d   : > { %v760_v37 = vrot.slane %v754_v57, 1  ;;  %v741_v35 = vrot.slane %v734_v50, 1 }
  0x91   : > { %570 = vrot.lane.b32.xlu1 %v565_v33, %s1844_s24  ;;  %v739_v33 = vrot.slane %v733_v25, 1 }
  0x93   : > { %568 = vrot.lane.b32.xlu0 %v564_v24, %s1844_s24  ;;  %582 = vrot.lane.b32.xlu2 %v578_v29, %s1844_s24  ;;  %v759_v24 = vrot.slane %v753_v32, 1  ;;  %v740_v26 = vsel %vm598_vm4, %v738_v36, %v739_v33  ;;  %v775_v29 = vmul.f32 %v773_v40, %v2349_v16  ;;  %v742_v58 = vsel %vm598_vm4, %v739_v33, %v741_v35 }
  0x94   : > { %v899_v32 = vrot.slane %v893_v18, 2  ;;  %v921_v36 = vrot.slane %v915_v21, 2  ;;  %v934_v33 = vstv %s1591_s27  ;;  %v916_v35 = vmul.f32 %v913_v19, %v2379_v45  ;;  %s1600_s27 = sld [smem:[#allocation4 + $0x12]] }
  0x95   : > { %v761_v28 = vsel %vm598_vm4, %v759_v24, %v760_v37  ;;  %v781_v51 = vrot.slane %v775_v29, 1  ;;  %v935_v29 = vmul.f32 %v934_v33, %v2342_v52 }
  0x96   : > { %v923_v39 = vrot.slane %v916_v35, 2 }
  0x97   : > { %v784_v42 = vsel %vm598_vm4, %v781_v51, %v783_v30  ;;  %v473_v30 = vstv %s2471_s12  ;;  %s1575_s12 = sld [smem:[#allocation4 + $0x1e]] }
  0x98   : > { %v474_v6 = vmul.f32 %v473_v30, %v2342_v52 }
  0x99   : > { %638 = vrot.lane.b32.xlu1 %v635_v4, %s1841_s3  ;;  %v774_v4 = vmul.f32 %v773_v40, %v2342_v52  ;;  %v936_v40 = vmul.f32 %v934_v33, %v2349_v16 }
  0x9b   : > { %584 = vrot.lane.b32.xlu0 %v579_v0, %s1844_s24  ;;  %640 = vrot.lane.b32.xlu2 %v637_v62, %s1841_s3  ;;  %v762_v0 = vrot.slane %v755_v11, 1  ;;  %v780_v63 = vrot.slane %v774_v4, 1  ;;  %v851_v62 = vmul.f32 %v850_v5, %v2342_v52  ;;  %v937_v11 = vmul.f32 %v934_v33, %v2383_v56 }
  0x9c   : > { %v942_v4 = vrot.slane %v936_v40, 2  ;;  %v976_v5 = vstv %s1593_s6  ;;  %s2568_s6 = sld [smem:[#allocation4 + $0x2c]] }
  0x9d   : > { %v763_v41 = vsel %vm598_vm4, %v760_v37, %v762_v0  ;;  %v782_v46 = vsel %vm598_vm4, %v780_v63, %v781_v51  ;;  %v944_v0 = vrot.slane %v937_v11, 2  ;;  %v467_v51 = vstv %s2466_s29  ;;  %s1601_s29 = sld [smem:[#allocation4 + $0x2b]] }
  0x9e   : > { %v941_v63 = vrot.slane %v935_v29, 2 }
  0x9f   : > { %v945_v9 = vsel %vm801_vm5, %v942_v4, %v944_v0 }
  0xa0   : > { %v943_v55 = vsel %vm801_vm5, %v941_v63, %v942_v4 }
  0xa1   : > { %661 = vrot.lane.b32.xlu1 %v658_v43, %s1841_s3  ;;  %v832_v43 = vmul.f32 %v829_v27, %v2379_v45  ;;  %v955_v27 = vstv %s1592_s5  ;;  %s2545_s5 = sld [smem:[#allocation4 + $0x13]] }
  0xa2   : > { %v956_v8 = vmul.f32 %v955_v27, %v2344_v15 }
  0xa3   : > { %659 = vrot.lane.b32.xlu0 %v656_v2, %s1841_s3  ;;  %680 = vrot.lane.b32.xlu2 %v677_v13, %s1842_s4  ;;  %v857_v2 = vrot.slane %v851_v62, 2  ;;  %v839_v44 = vrot.slane %v832_v43, 2  ;;  %v874_v13 = vmul.f32 %v871_v47, %v2379_v45  ;;  %v957_v62 = vmul.f32 %v955_v27, %v2351_v61 }
  0xa4   : > { %v978_v43 = vmul.f32 %v976_v5, %v2349_v16 }
  0xa5   : > { %v859_v12 = vsel %vm801_vm5, %v857_v2, %v858_v31  ;;  %v840_v3 = vsel %vm801_vm5, %v837_v60, %v839_v44  ;;  %v958_v60 = vmul.f32 %v955_v27, %v2379_v45  ;;  %v962_v2 = vrot.slane %v956_v8, 2 }
  0xa6   : > { %v984_v48 = vrot.slane %v978_v43, 2 }
  0xa7   : > { %v965_v49 = vrot.slane %v958_v60, 2 }
  0xa9   : > { %701 = vrot.lane.b32.xlu1 %v698_v22, %s1842_s4  ;;  %v872_v22 = vmul.f32 %v871_v47, %v2344_v15  ;;  %v963_v47 = vrot.slane %v957_v62, 2 }
  0xab   : > { %682 = vrot.lane.b32.xlu0 %v679_v34, %s1842_s4  ;;  %703 = vrot.lane.b32.xlu2 %v700_v20, %s1842_s4  ;;  %v881_v34 = vrot.slane %v874_v13, 2  ;;  %v878_v53 = vrot.slane %v872_v22, 2  ;;  %v914_v20 = vmul.f32 %v913_v19, %v2344_v15  ;;  %v1032_v13 = vstv %s1596_s7  ;;  %s2571_s7 = sld [smem:[#allocation4 + $0x15]] }
  0xac   : > { %v979_v22 = vmul.f32 %v976_v5, %v2383_v56  ;;  %v1034_v19 = vmul.f32 %v1032_v13, %v2351_v61  ;;  %v1033_v18 = vmul.f32 %v1032_v13, %v2344_v15 }
  0xad   : > { %v882_v38 = vsel %vm801_vm5, %v879_v1, %v881_v34  ;;  %v880_v25 = vsel %vm801_vm5, %v878_v53, %v879_v1  ;;  %v920_v50 = vrot.slane %v914_v20, 2  ;;  %v469_v34 = vmul.f32 %v467_v51, %v2351_v61 }
  0xae   : > { %v986_v20 = vrot.slane %v979_v22, 2  ;;  %v1116_v22 = vstv %s1600_s27  ;;  %s1584_s27 = sld [smem:[#allocation4 + $0xa]] }
  0xb1   : > { %724 = vrot.lane.b32.xlu1 %v721_v23, %s1843_s17  ;;  %v895_v23 = vmul.f32 %v892_v17, %v2383_v56  ;;  %v475_v17 = vmul.f32 %v473_v30, %v2349_v16 }
  0xb3   : > { %722 = vrot.lane.b32.xlu0 %v719_v7, %s1843_s17  ;;  %743 = vrot.lane.b32.xlu2 %v740_v26, %s1843_s17  ;;  %v900_v7 = vrot.slane %v894_v59, 2  ;;  %v902_v24 = vrot.slane %v895_v23, 2  ;;  %v922_v26 = vsel %vm801_vm5, %v920_v50, %v921_v36  ;;  %v477_v23 = vadd.f32 %v475_v17, %v469_v34 }
  0xb4   : > { %v1039_v50 = vrot.slane %v1033_v18, 3  ;;  %v1137_v34 = vstv %s1601_s29  ;;  %v1117_v17 = vmul.f32 %v1116_v22, %v2344_v15  ;;  %s1585_s29 = sld [smem:[#allocation4 + $0x23]] }
  0xb5   : > { %v901_v37 = vsel %vm801_vm5, %v899_v32, %v900_v7  ;;  %v1040_v32 = vrot.slane %v1034_v19, 3 }
  0xb7   : > { %v1041_v4 = vsel %vm1004_vm6, %v1039_v50, %v1040_v32 }
  0xb9   : > { %764 = vrot.lane.b32.xlu1 %v761_v28, %s1844_s24  ;;  %v903_v28 = vsel %vm801_vm5, %v900_v7, %v902_v24  ;;  %v1074_v24 = vstv %s1598_s18  ;;  %s1608_s18 = sld [smem:[#allocation4 + $0x16]] }
  0xba   : > { %v1076_v29 = vmul.f32 %v1074_v24, %v2351_v61 }
  0xbb   : > { %745 = vrot.lane.b32.xlu0 %v742_v58, %s1843_s17  ;;  %766 = vrot.lane.b32.xlu2 %v763_v41, %s1844_s24  ;;  %v924_v41 = vsel %vm801_vm5, %v921_v36, %v923_v39  ;;  %v1053_v36 = vstv %s1597_s8  ;;  %s1607_s8 = sld [smem:[#allocation4 + $0x2e]] }
  0xbc   : > { %v1054_v35 = vmul.f32 %v1053_v36, %v2342_v52  ;;  %v1056_v0 = vmul.f32 %v1053_v36, %v2383_v56 }
  0xc1   : > { %787 = vrot.lane.b32.xlu1 %v784_v42, %s1844_s24  ;;  %v468_v42 = vmul.f32 %v467_v51, %v2344_v15  ;;  %v1060_v51 = vrot.slane %v1054_v35, 3 }
  0xc3   : > { %785 = vrot.lane.b32.xlu0 %v782_v46, %s1844_s24  ;;  %841 = vrot.lane.b32.xlu2 %v838_v10, %s1841_s3  ;;  %v977_v46 = vmul.f32 %v976_v5, %v2342_v52  ;;  %v476_v44 = vadd.f32 %v474_v6, %v468_v42  ;;  %v1063_v6 = vrot.slane %v1056_v0, 3  ;;  %v1095_v42 = vstv %s1599_s21  ;;  %s1609_s21 = sld [smem:[#allocation4 + $0x2f]] }
  0xc4   : > { %v1097_v60 = vmul.f32 %v1095_v42, %v2349_v16  ;;  %v1140_v0 = vmul.f32 %v1137_v34, %v2383_v56 }
  0xc5   : > { %v983_v10 = vrot.slane %v977_v46, 2 }
  0xc7   : > { %v985_v53 = vsel %vm801_vm5, %v983_v10, %v984_v48  ;;  %v1096_v10 = vmul.f32 %v1095_v42, %v2342_v52 }
  0xc9   : > { %862 = vrot.lane.b32.xlu1 %v859_v12, %s1841_s3 }
  0xcb   : > { %843 = vrot.lane.b32.xlu0 %v840_v3, %s1841_s3  ;;  %864 = vrot.lane.b32.xlu2 %v861_v54, %s1841_s3  ;;  %v964_v3 = vsel %vm801_vm5, %v962_v2, %v963_v47  ;;  %v1035_v54 = vmul.f32 %v1032_v13, %v2379_v45  ;;  %v1098_v2 = vmul.f32 %v1095_v42, %v2383_v56  ;;  %v1103_v13 = vrot.slane %v1097_v60, 3 }
  0xcc   : > { %v1147_v60 = vrot.slane %v1140_v0, 3 }
  0xcd   : > { %v2468_v57 = vpop.permute.xlu2 %512  ;;  %v1042_v7 = vrot.slane %v1035_v54, 3 }
  0xcf   : > { %v1043_v11 = vsel %vm1004_vm6, %v1040_v32, %v1042_v7  ;;  %v1139_v32 = vmul.f32 %v1137_v34, %v2349_v16 }
  0xd1   : > { %885 = vrot.lane.b32.xlu1 %v882_v38, %s1842_s4  ;;  %v966_v38 = vsel %vm801_vm5, %v963_v47, %v965_v49  ;;  %v591_v49 = vstv %s1574_s26  ;;  %s1610_s26 = sld [smem:[#allocation4 + $0x17]] }
  0xd2   : > { %v592_v54 = vmul.f32 %v591_v49, %v2344_v15 }
  0xd3   : > { %883 = vrot.lane.b32.xlu0 %v880_v25, %s1842_s4  ;;  %904 = vrot.lane.b32.xlu2 %v901_v37, %s1842_s4  ;;  %v987_v37 = vsel %vm801_vm5, %v984_v48, %v986_v20  ;;  %v1118_v20 = vmul.f32 %v1116_v22, %v2351_v61 }
  0xd5   : > { %v2482_v58 = vpop.permute.xlu2 %514 }
  0xd9   : > { %925 = vrot.lane.b32.xlu1 %v922_v26, %s1843_s17 }
  0xdb   : > { %906 = vrot.lane.b32.xlu0 %v903_v28, %s1842_s4  ;;  %927 = vrot.lane.b32.xlu2 %v924_v41, %s1843_s17  ;;  %v1075_v28 = vmul.f32 %v1074_v24, %v2344_v15  ;;  %v1082_v41 = vrot.slane %v1076_v29, 3 }
  0xdd   : > { %v2499_v31 = vpop.permute.xlu2 %540  ;;  %v1081_v5 = vrot.slane %v1075_v28, 3 }
  0xe1   : > { %948 = vrot.lane.b32.xlu1 %v945_v9, %s1843_s17  ;;  %v1077_v9 = vmul.f32 %v1074_v24, %v2379_v45 }
  0xe3   : > { %946 = vrot.lane.b32.xlu0 %v943_v55, %s1843_s17  ;;  %v499_v12 = vpop.permute.xlu1 %498  ;;  %967 = vrot.lane.b32.xlu2 %v964_v3, %s1844_s24  ;;  %v1083_v55 = vsel %vm1004_vm6, %v1081_v5, %v1082_v41  ;;  %v1084_v48 = vrot.slane %v1077_v9, 3  ;;  %v1105_v3 = vrot.slane %v1098_v2, 3 }
  0xe5   : > { %v485_v14 = vpop.permute.xlu0 %484  ;;  %v2513_v21 = vpop.permute.xlu2 %556 }
  0xe6   : > { %v490_v1 = vadd.f32 %v485_v14, %v476_v44 }
  0xe8   : > { %v504_v59 = vadd.f32 %v499_v12, %v490_v1  ;;  %v1102_v1 = vrot.slane %v1096_v10, 3 }
  0xe9   : > { %988 = vrot.lane.b32.xlu1 %v985_v53, %s1844_s24 }
  0xea   : > { %v518_v25 = vadd.f32 %v2468_v57, %v504_v59  ;;  %v1055_v57 = vmul.f32 %v1053_v36, %v2349_v16  ;;  %v2551_v59 = vmul.f32 %v591_v49, %v2351_v61  ;;  %v1104_v50 = vsel %vm1004_vm6, %v1102_v1, %v1103_v13 }
  0xeb   : > { %969 = vrot.lane.b32.xlu0 %v966_v38, %s1844_s24  ;;  %v501_v33 = vpop.permute.xlu1 %500  ;;  %990 = vrot.lane.b32.xlu2 %v987_v37, %s1844_s24  ;;  %v609_v38 = vstv %s1575_s12  ;;  %v1119_v36 = vmul.f32 %v1116_v22, %v2379_v45  ;;  %v1179_v22 = vstv %s2568_s6  ;;  %s1611_s12 = sld [smem:[#allocation4 + $0x30]] }
  0xec   : > { %v1061_v63 = vrot.slane %v1055_v57, 3  ;;  %v610_v24 = vmul.f32 %v609_v38, %v2342_v52  ;;  %v611_v37 = vmul.f32 %v609_v38, %v2349_v16  ;;  %v1124_v57 = vrot.slane %v1118_v20, 3  ;;  %s1605_s6 = sld [smem:[#allocation4 + $0x2d]] }
  0xed   : > { %v487_v40 = vpop.permute.xlu0 %486  ;;  %v2527_v30 = vpop.permute.xlu2 %582  ;;  %v1126_v29 = vrot.slane %v1119_v36, 3  ;;  %v612_v42 = vmul.f32 %v609_v38, %v2383_v56  ;;  %v1235_v1 = vstv %s2571_s7 }
  0xee   : > { %v491_v26 = vadd.f32 %v487_v40, %v477_v23  ;;  %v1062_v62 = vsel %vm1004_vm6, %v1060_v51, %v1061_v63  ;;  %v1064_v47 = vsel %vm1004_vm6, %v1061_v63, %v1063_v6  ;;  %v1138_v23 = vmul.f32 %v1137_v34, %v2342_v52 }
  0xef   : > { %v599_v40 = vrot.slane %v592_v54, 1  ;;  %v616_v63 = vrot.slane %v610_v24, 1  ;;  %v617_v5 = vrot.slane %v611_v37, 1  ;;  %v1236_v20 = vmul.f32 %v1235_v1, %v2344_v15 }
  0xf0   : > { %v505_v39 = vadd.f32 %v501_v33, %v491_v26  ;;  %v1123_v33 = vrot.slane %v1117_v17, 3  ;;  %v600_v26 = vrot.slane %v2551_v59, 1  ;;  %v1181_v59 = vmul.f32 %v1179_v22, %v2349_v16 }
  0xf1   : > { %1046 = vrot.lane.b32.xlu1 %v1043_v11, %s1841_s3  ;;  %v1145_v11 = vrot.slane %v1139_v32, 3  ;;  %v618_v2 = vsel %vm598_vm4, %v616_v63, %v617_v5  ;;  %v1242_v37 = vrot.slane %v1236_v20, 4 }
  0xf2   : > { %v519_v27 = vadd.f32 %v2482_v58, %v505_v39  ;;  %v1158_v39 = vstv %s2545_s5  ;;  %v601_v6 = vsel %vm598_vm4, %v599_v40, %v600_v26  ;;  %v1187_v24 = vrot.slane %v1181_v59, 3  ;;  %s1612_s5 = sld [smem:[#allocation4 + $0x18]] }
  0xf3   : > { %1044 = vrot.lane.b32.xlu0 %v1041_v4, %s1841_s3  ;;  %v529_v8 = vpop.permute.xlu1 %528  ;;  %1065 = vrot.lane.b32.xlu2 %v1062_v62, %s1841_s3  ;;  %v1125_v4 = vsel %vm1004_vm6, %v1123_v33, %v1124_v57  ;;  %v1160_v9 = vmul.f32 %v1158_v39, %v2351_v61  ;;  %v1148_v34 = vsel %vm1004_vm6, %v1145_v11, %v1147_v60 }
  0xf4   : > { %v533_v46 = vadd.f32 %v529_v8, %v519_v27 }
  0xf5   : > { %v527_v43 = vpop.permute.xlu0 %526  ;;  %v2541_v12 = vpop.permute.xlu2 %640 }
  0xf6   : > { %v532_v58 = vadd.f32 %v527_v43, %v518_v25  ;;  %v1106_v25 = vsel %vm1004_vm6, %v1103_v13, %v1105_v3  ;;  %v1159_v43 = vmul.f32 %v1158_v39, %v2344_v15 }
  0xf8   : > { %v546_v44 = vadd.f32 %v2499_v31, %v532_v58  ;;  %v1085_v31 = vsel %vm1004_vm6, %v1082_v41, %v1084_v48  ;;  %v594_v41 = vmul.f32 %v591_v49, %v2379_v45  ;;  %v619_v48 = vrot.slane %v612_v42, 1 }
  0xf9   : > { %1086 = vrot.lane.b32.xlu1 %v1083_v55, %s1842_s4  ;;  %v1127_v55 = vsel %vm1004_vm6, %v1124_v57, %v1126_v29  ;;  %v1166_v49 = vrot.slane %v1160_v9, 3  ;;  %v1165_v3 = vrot.slane %v1159_v43, 3  ;;  %v1238_v29 = vmul.f32 %v1235_v1, %v2379_v45 }
  0xfa   : > { %v620_v54 = vsel %vm598_vm4, %v617_v5, %v619_v48  ;;  %v1277_v9 = vstv %s1608_s18 }
  0xfb   : > { %1067 = vrot.lane.b32.xlu0 %v1064_v47, %s1841_s3  ;;  %v555_v14 = vpop.permute.xlu1 %554  ;;  %1088 = vrot.lane.b32.xlu2 %v1085_v31, %s1842_s4  ;;  %v1180_v31 = vmul.f32 %v1179_v22, %v2342_v52 }
  0xfc   : > { %v560_v53 = vadd.f32 %v555_v14, %v546_v44  ;;  %v602_v44 = vrot.slane %v594_v41, 1 }
  0xfd   : > { %v543_v19 = vpop.permute.xlu0 %542  ;;  %v2563_v35 = vpop.permute.xlu2 %680 }
  0xfe   : > { %v547_v18 = vadd.f32 %v543_v19, %v533_v46  ;;  %v1161_v46 = vmul.f32 %v1158_v39, %v2379_v45  ;;  %v603_v17 = vsel %vm598_vm4, %v600_v26, %v602_v44 }
 0x100   : > { %v561_v7 = vadd.f32 %v2513_v21, %v547_v18  ;;  %v1144_v21 = vrot.slane %v1138_v23, 3  ;;  %v1168_v13 = vrot.slane %v1161_v46, 3  ;;  %v1182_v23 = vmul.f32 %v1179_v22, %v2383_v56 }
 0x101   : > { %1109 = vrot.lane.b32.xlu1 %v1106_v25, %s1842_s4  ;;  %v1237_v25 = vmul.f32 %v1235_v1, %v2351_v61 }
 0x102   : > { %v1146_v62 = vsel %vm1004_vm6, %v1144_v21, %v1145_v11  ;;  %v1169_v38 = vsel %vm1004_vm6, %v1166_v49, %v1168_v13  ;;  %v1189_v26 = vrot.slane %v1182_v23, 3  ;;  %v1256_v11 = vstv %s1607_s8 }
 0x103   : > { %1107 = vrot.lane.b32.xlu0 %v1104_v50, %s1842_s4  ;;  %v571_v28 = vpop.permute.xlu1 %570  ;;  %1128 = vrot.lane.b32.xlu2 %v1125_v4, %s1843_s17  ;;  %v1186_v50 = vrot.slane %v1180_v31, 3  ;;  %v1243_v40 = vrot.slane %v1237_v25, 4  ;;  %v1259_v63 = vmul.f32 %v1256_v11, %v2383_v56  ;;  %v1257_v41 = vmul.f32 %v1256_v11, %v2342_v52 }
 0x104   : > { %v575_v51 = vadd.f32 %v571_v28, %v561_v7  ;;  %v1167_v7 = vsel %vm1004_vm6, %v1165_v3, %v1166_v49  ;;  %v1190_v5 = vsel %vm1004_vm6, %v1187_v24, %v1189_v26 }
 0x105   : > { %v569_v27 = vpop.permute.xlu0 %568  ;;  %v2586_v47 = vpop.permute.xlu2 %703  ;;  %v1188_v28 = vsel %vm1004_vm6, %v1186_v50, %v1187_v24  ;;  %v1263_v43 = vrot.slane %v1257_v41, 4  ;;  %v2655_v41 = vld [vmem:[#allocation3] sm:$0xff] }
 0x106   : > { %v574_v8 = vadd.f32 %v569_v27, %v560_v53  ;;  %v1258_v27 = vmul.f32 %v1256_v11, %v2349_v16  ;;  %v1340_v11 = vstv %s1611_s12 }
 0x108   : > { %v588_v58 = vadd.f32 %v2527_v30, %v574_v8  ;;  %v1245_v8 = vrot.slane %v1238_v29, 4  ;;  %v1264_v42 = vrot.slane %v1258_v27, 4 }
 0x109   : > { %1149 = vrot.lane.b32.xlu1 %v1146_v62, %s1843_s17  ;;  %v1266_v62 = vrot.slane %v1259_v63, 4 }
 0x10a   : > { %v606_v10 = vadd.f32 %v601_v6, %v588_v58  ;;  %v1298_v58 = vstv %s1609_s21  ;;  %v1265_v22 = vsel %vm1207_vm7, %v1263_v43, %v1264_v42  ;;  %v1343_v43 = vmul.f32 %v1340_v11, %v2383_v56 }
 0x10b   : > { %1130 = vrot.lane.b32.xlu0 %v1127_v55, %s1843_s17  ;;  %v639_v14 = vpop.permute.xlu1 %638  ;;  %1151 = vrot.lane.b32.xlu2 %v1148_v34, %s1843_s17  ;;  %v1278_v55 = vmul.f32 %v1277_v9, %v2344_v15  ;;  %v1267_v48 = vsel %vm1207_vm7, %v1264_v42, %v1266_v62  ;;  %v1299_v49 = vmul.f32 %v1298_v58, %v2342_v52 }
 0x10c   : > { %v623_v30 = vadd.f32 %v618_v2, %v606_v10  ;;  %v1279_v10 = vmul.f32 %v1277_v9, %v2351_v61  ;;  %v1300_v13 = vmul.f32 %v1298_v58, %v2349_v16  ;;  %v1342_v62 = vmul.f32 %v1340_v11, %v2349_v16 }
 0x10d   : > { %v585_v53 = vpop.permute.xlu0 %584  ;;  %v2603_v36 = vpop.permute.xlu2 %743  ;;  %v1305_v31 = vrot.slane %v1299_v49, 4 }
 0x10e   : > { %v644_v19 = vadd.f32 %v639_v14, %v623_v30  ;;  %v589_v18 = vadd.f32 %v585_v53, %v575_v51  ;;  %v1244_v51 = vsel %vm1207_vm7, %v1242_v37, %v1243_v40  ;;  %v1280_v30 = vmul.f32 %v1277_v9, %v2379_v45 }
 0x10f   : > { %v1284_v14 = vrot.slane %v1278_v55, 4  ;;  %v1285_v34 = vrot.slane %v1279_v10, 4 }
 0x110   : > { %v607_v32 = vadd.f32 %v603_v17, %v589_v18  ;;  %v1306_v17 = vrot.slane %v1300_v13, 4  ;;  %v1301_v18 = vmul.f32 %v1298_v58, %v2383_v56  ;;  %v1348_v13 = vrot.slane %v1342_v62, 4 }
 0x111   : > { %1172 = vrot.lane.b32.xlu1 %v1169_v38, %s1844_s24 }
 0x112   : > { %v624_v33 = vadd.f32 %v620_v54, %v607_v32  ;;  %v1286_v54 = vsel %vm1207_vm7, %v1284_v14, %v1285_v34  ;;  %v1307_v25 = vsel %vm1207_vm7, %v1305_v31, %v1306_v17  ;;  %v1308_v24 = vrot.slane %v1301_v18, 4 }
 0x113   : > { %1170 = vrot.lane.b32.xlu0 %v1167_v7, %s1844_s24  ;;  %v662_v21 = vpop.permute.xlu1 %661  ;;  %1191 = vrot.lane.b32.xlu2 %v1188_v28, %s1844_s24 }
 0x114   : > { %v645_v57 = vadd.f32 %v2541_v12, %v624_v33 }
 0x115   : > { %v660_v39 = vpop.permute.xlu0 %659  ;;  %v2617_v6 = vpop.permute.xlu2 %766 }
 0x116   : > { %v666_v4 = vadd.f32 %v662_v21, %v645_v57  ;;  %v665_v0 = vadd.f32 %v660_v39, %v644_v19  ;;  %v1287_v19 = vrot.slane %v1280_v30, 4  ;;  %v812_v21 = vstv %s1585_s29 }
 0x117   : > { %v1361_v39 = vstv %s1612_s5  ;;  %v814_v42 = vmul.f32 %v812_v21, %v2349_v16  ;;  %v815_v16 = vmul.f32 %v812_v21, %v2383_v56 }
 0x118   : > { %v686_v12 = vadd.f32 %v2563_v35, %v665_v0  ;;  %v1246_v35 = vsel %vm1207_vm7, %v1243_v40, %v1245_v8  ;;  %v1288_v50 = vsel %vm1207_vm7, %v1285_v34, %v1287_v19  ;;  %v794_v40 = vstv %s1584_s27 }
 0x119   : > { %1247 = vrot.lane.b32.xlu1 %v1244_v51, %s1841_s3  ;;  %v796_v27 = vmul.f32 %v794_v40, %v2351_v61  ;;  %v797_v63 = vmul.f32 %v794_v40, %v2379_v45  ;;  %v813_v8 = vmul.f32 %v2655_v41, %v812_v21  ;;  %v820_v49 = vrot.slane %v814_v42, 2 }
 0x11a   : > { %v1364_v31 = vmul.f32 %v1361_v39, %v2379_v45 }
 0x11b   : > { %1193 = vrot.lane.b32.xlu0 %v1190_v5, %s1844_s24  ;;  %v702_v46 = vpop.permute.xlu1 %701  ;;  %1249 = vrot.lane.b32.xlu2 %v1246_v35, %s1841_s3 }
 0x11c   : > { %v707_v60 = vadd.f32 %v702_v46, %v686_v12  ;;  %v795_v12 = vmul.f32 %v794_v40, %v2344_v15  ;;  %v1363_v46 = vmul.f32 %v1361_v39, %v2351_v61 }
 0x11d   : > { %v683_v2 = vpop.permute.xlu0 %682  ;;  %v2631_v1 = vpop.permute.xlu2 %841 }
 0x11e   : > { %v687_v44 = vadd.f32 %v683_v2, %v666_v4  ;;  %v1341_v4 = vmul.f32 %v1340_v11, %v2342_v52  ;;  %v1362_v52 = vmul.f32 %v1361_v39, %v2344_v15  ;;  %v805_v2 = vrot.slane %v797_v63, 2 }
 0x120   : > { %v708_v3 = vadd.f32 %v2586_v47, %v687_v44  ;;  %v1319_v47 = vstv %s1610_s26  ;;  %v1347_v55 = vrot.slane %v1341_v4, 4  ;;  %v802_v44 = vrot.slane %v795_v12, 2 }
 0x121   : > { %1270 = vrot.lane.b32.xlu1 %v1267_v48, %s1841_s3  ;;  %v1321_v23 = vmul.f32 %v1319_v47, %v2351_v61  ;;  %v1322_v32 = vmul.f32 %v1319_v47, %v2379_v45  ;;  %v1320_v33 = vmul.f32 %v1319_v47, %v2344_v15  ;;  %v819_v48 = vrot.slane %v813_v8, 2 }
 0x122   : > { %v1349_v34 = vsel %vm1207_vm7, %v1347_v55, %v1348_v13 }
 0x123   : > { %1268 = vrot.lane.b32.xlu0 %v1265_v22, %s1841_s3  ;;  %v725_v53 = vpop.permute.xlu1 %724  ;;  %1289 = vrot.lane.b32.xlu2 %v1286_v54, %s1842_s4  ;;  %v1327_v26 = vrot.slane %v1321_v23, 4  ;;  %v1329_v57 = vrot.slane %v1322_v32, 4  ;;  %v1326_v29 = vrot.slane %v1320_v33, 4  ;;  %s2648_s3 = sld [smem:[#allocation4 + $0x31]]  ;;  %v1350_v22 = vrot.slane %v1343_v43, 4 }
 0x124   : > { %v729_v59 = vadd.f32 %v725_v53, %v708_v3  ;;  %v1368_v3 = vrot.slane %v1362_v52, 4  ;;  %v822_v54 = vrot.slane %v815_v16, 2 }
 0x125   : > { %v723_v38 = vpop.permute.xlu0 %722  ;;  %v2644_v37 = vpop.permute.xlu2 %864  ;;  %v1330_v9 = vsel %vm1207_vm7, %v1327_v26, %v1329_v57  ;;  %v1328_v35 = vsel %vm1207_vm7, %v1326_v29, %v1327_v26 }
 0x126   : > { %v728_v20 = vadd.f32 %v723_v38, %v707_v60  ;;  %v803_v60 = vrot.slane %v796_v27, 2  ;;  %v823_v40 = vsel %vm801_vm5, %v820_v49, %v822_v54 }
 0x128   : > { %v749_v7 = vadd.f32 %v2603_v36, %v728_v20  ;;  %v1309_v36 = vsel %vm1207_vm7, %v1306_v17, %v1308_v24  ;;  %v806_v17 = vsel %vm801_vm5, %v803_v60, %v805_v2  ;;  %v804_v19 = vsel %vm801_vm5, %v802_v44, %v803_v60 }
 0x129   : > { %1310 = vrot.lane.b32.xlu1 %v1307_v25, %s1842_s4  ;;  %v1382_v14 = vstv %s2648_s3  ;;  %v1351_v20 = vsel %vm1207_vm7, %v1348_v13, %v1350_v22  ;;  %v2680_v25 = vld [vmem:[#allocation3 + $0x8] sm:$0xff]  ;;  %v1371_v24 = vrot.slane %v1364_v31, 4 }
 0x12a   : > { %v1384_v23 = vmul.f32 %v2680_v25, %v1382_v14  ;;  %v1385_v32 = vmul.f32 %v1382_v14, %v2383_v56  ;;  %v1383_v33 = vmul.f32 %v2655_v41, %v1382_v14 }
 0x12b   : > { %1291 = vrot.lane.b32.xlu0 %v1288_v50, %s1842_s4  ;;  %v765_v28 = vpop.permute.xlu1 %764  ;;  %1312 = vrot.lane.b32.xlu2 %v1309_v36, %s1842_s4  ;;  %s1594_s4 = sld [smem:[#allocation4 + $0xf]] }
 0x12c   : > { %v770_v0 = vadd.f32 %v765_v28, %v749_v7  ;;  %v1390_v21 = vrot.slane %v1384_v23, 4  ;;  %v1392_v11 = vrot.slane %v1385_v32, 4  ;;  %v1389_v39 = vrot.slane %v1383_v33, 4 }
 0x12d   : > { %v746_v51 = vpop.permute.xlu0 %745  ;;  %v2668_v10 = vpop.permute.xlu2 %904 }
 0x12e   : > { %v750_v5 = vadd.f32 %v746_v51, %v729_v59  ;;  %v821_v59 = vsel %vm801_vm5, %v819_v48, %v820_v49  ;;  %v1393_v27 = vsel %vm1207_vm7, %v1390_v21, %v1392_v11  ;;  %v1391_v63 = vsel %vm1207_vm7, %v1389_v39, %v1390_v21 }
 0x130   : > { %v771_v58 = vadd.f32 %v2617_v6, %v750_v5  ;;  %v1369_v6 = vrot.slane %v1363_v46, 4 }
 0x131   : > { %1333 = vrot.lane.b32.xlu1 %v1330_v9, %s1843_s17  ;;  %v997_v22 = vstv %s1594_s4 }
 0x132   : > { %v1370_v38 = vsel %vm1207_vm7, %v1368_v3, %v1369_v6  ;;  %v1372_v36 = vsel %vm1207_vm7, %v1369_v6, %v1371_v24  ;;  %v1000_v14 = vmul.f32 %v997_v22, %v2379_v45 }
 0x133   : > { %1331 = vrot.lane.b32.xlu0 %v1328_v35, %s1843_s17  ;;  %v788_v30 = vpop.permute.xlu1 %787  ;;  %1352 = vrot.lane.b32.xlu2 %v1349_v34, %s1843_s17 }
 0x134   : > { %v792_v53 = vadd.f32 %v788_v30, %v771_v58  ;;  %v1008_v54 = vrot.slane %v1000_v14, 3  ;;  %v1218_v14 = vstv %s1605_s6 }
 0x135   : > { %v786_v47 = vpop.permute.xlu0 %785  ;;  %v928_v26 = vpop.permute.xlu2 %927 }
 0x136   : > { %v791_v18 = vadd.f32 %v786_v47, %v770_v0  ;;  %v810_v7 = vadd.f32 %v806_v17, %v792_v53  ;;  %v999_v17 = vmul.f32 %v997_v22, %v2351_v61 }
 0x138   : > { %v809_v50 = vadd.f32 %v804_v19, %v791_v18  ;;  %v827_v29 = vadd.f32 %v823_v40, %v810_v7  ;;  %v1722_v18 = vld [vmem:[#allocation3 + $0x10] sm:$0xf]  ;;  %v1006_v32 = vrot.slane %v999_v17, 3 }
 0x139   : > { %1373 = vrot.lane.b32.xlu1 %v1370_v38, %s1844_s24 }
 0x13a   : > { %v826_v57 = vadd.f32 %v821_v59, %v809_v50  ;;  %v1009_v40 = vsel %vm1004_vm6, %v1006_v32, %v1008_v54 }
 0x13b   : > { %1354 = vrot.lane.b32.xlu0 %v1351_v20, %s1843_s17  ;;  %v863_v56 = vpop.permute.xlu1 %862  ;;  %1375 = vrot.lane.b32.xlu2 %v1372_v36, %s1844_s24  ;;  %s1595_s17 = sld [smem:[#allocation4 + $0x28]] }
 0x13c   : > { %v847_v28 = vadd.f32 %v2631_v1, %v826_v57 }
 0x13d   : > { %v844_v4 = vpop.permute.xlu0 %843  ;;  %v968_v12 = vpop.permute.xlu2 %967 }
 0x13e   : > { %v868_v0 = vadd.f32 %v863_v56, %v847_v28  ;;  %v848_v51 = vadd.f32 %v844_v4, %v827_v29 }
 0x140   : > { %v869_v2 = vadd.f32 %v2644_v37, %v848_v51  ;;  %v998_v37 = vmul.f32 %v997_v22, %v2344_v15 }
 0x141   : > { %1396 = vrot.lane.b32.xlu1 %v1393_v27, %s1844_s24  ;;  %v1015_v19 = vstv %s1595_s17 }
 0x142   : > { %v1018_v59 = vmul.f32 %v1722_v18, %v1015_v19  ;;  %v1005_v7 = vrot.slane %v998_v37, 3  ;;  %v1016_v33 = vmul.f32 %v2655_v41, %v1015_v19 }
 0x143   : > { %1394 = vrot.lane.b32.xlu0 %v1391_v63, %s1844_s24  ;;  %v886_v1 = vpop.permute.xlu1 %885  ;;  %s1604_s24 = sld [smem:[#allocation4 + $0x14]] }
 0x144   : > { %v890_v44 = vadd.f32 %v886_v1, %v869_v2  ;;  %v1007_v11 = vsel %vm1004_vm6, %v1005_v7, %v1006_v32  ;;  %v1022_v56 = vrot.slane %v1016_v33, 3 }
 0x145   : > { %v884_v5 = vpop.permute.xlu0 %883  ;;  %v991_v42 = vpop.permute.xlu2 %990 }
 0x146   : > { %v889_v49 = vadd.f32 %v884_v5, %v868_v0 }
 0x148   : > { %v910_v30 = vadd.f32 %v2668_v10, %v889_v49  ;;  %v1017_v10 = vmul.f32 %v2680_v25, %v1015_v19 }
 0x149   : > { %v1200_v49 = vstv %s1604_s24 }
 0x14a   : > { %v1023_v21 = vrot.slane %v1017_v10, 3  ;;  %v1203_v22 = vmul.f32 %v1200_v49, %v2379_v45  ;;  %v1219_v45 = vmul.f32 %v2655_v41, %v1218_v14 }
 0x14b   : > { %v926_v8 = vpop.permute.xlu1 %925 }
 0x14c   : > { %v931_v31 = vadd.f32 %v926_v8, %v910_v30  ;;  %v1024_v27 = vsel %vm1004_vm6, %v1022_v56, %v1023_v21 }
 0x14d   : > { %v907_v62 = vpop.permute.xlu0 %906  ;;  %v1066_v46 = vpop.permute.xlu2 %1065 }
 0x14e   : > { %v911_v48 = vadd.f32 %v907_v62, %v890_v44 }
 0x150   : > { %v932_v6 = vadd.f32 %v928_v26, %v911_v48  ;;  %v1025_v26 = vrot.slane %v1018_v59, 3 }
 0x152   : > { %v1026_v29 = vsel %vm1004_vm6, %v1023_v21, %v1025_v26 }
 0x153   : > { %v949_v9 = vpop.permute.xlu1 %948 }
 0x154   : > { %v953_v34 = vadd.f32 %v949_v9, %v932_v6 }
 0x155   : > { %v947_v52 = vpop.permute.xlu0 %946  ;;  %v1089_v35 = vpop.permute.xlu2 %1088 }
 0x156   : > { %v952_v47 = vadd.f32 %v947_v52, %v931_v31 }
 0x158   : > { %v973_v24 = vadd.f32 %v968_v12, %v952_v47 }
 0x15b   : > { %v989_v43 = vpop.permute.xlu1 %988 }
 0x15c   : > { %v994_v57 = vadd.f32 %v989_v43, %v973_v24 }
 0x15d   : > { %v970_v58 = vpop.permute.xlu0 %969  ;;  %v1129_v16 = vpop.permute.xlu2 %1128 }
 0x15e   : > { %v974_v53 = vadd.f32 %v970_v58, %v953_v34  ;;  %v1012_v4 = vadd.f32 %v1007_v11, %v994_v57  ;;  %v1211_v34 = vrot.slane %v1203_v22, 4 }
 0x160   : > { %v995_v50 = vadd.f32 %v991_v42, %v974_v53  ;;  %v1029_v63 = vadd.f32 %v1024_v27, %v1012_v4  ;;  %v1220_v53 = vmul.f32 %v2680_v25, %v1218_v14 }
 0x162   : > { %v1013_v28 = vadd.f32 %v1009_v40, %v995_v50 }
 0x163   : > { %v1047_v55 = vpop.permute.xlu1 %1046 }
 0x164   : > { %v1030_v51 = vadd.f32 %v1026_v29, %v1013_v28 }
 0x165   : > { %v1045_v60 = vpop.permute.xlu0 %1044  ;;  %v1152_v20 = vpop.permute.xlu2 %1151 }
 0x166   : > { %v1051_v12 = vadd.f32 %v1047_v55, %v1030_v51  ;;  %v1050_v1 = vadd.f32 %v1045_v60, %v1029_v63  ;;  %v1202_v55 = vmul.f32 %v1200_v49, %v2351_v61 }
 0x168   : > { %v1071_v62 = vadd.f32 %v1066_v46, %v1050_v1  ;;  %v1209_v37 = vrot.slane %v1202_v55, 4 }
 0x16a   : > { %v1212_v61 = vsel %vm1207_vm7, %v1209_v37, %v1211_v34 }
 0x16b   : > { %v1087_v13 = vpop.permute.xlu1 %1086 }
 0x16c   : > { %v1092_v43 = vadd.f32 %v1087_v13, %v1071_v62 }
 0x16d   : > { %v1068_v3 = vpop.permute.xlu0 %1067  ;;  %v1192_v0 = vpop.permute.xlu2 %1191 }
 0x16e   : > { %v1072_v8 = vadd.f32 %v1068_v3, %v1051_v12  ;;  %v1201_v3 = vmul.f32 %v1200_v49, %v2344_v15 }
 0x170   : > { %v1093_v52 = vadd.f32 %v1089_v35, %v1072_v8  ;;  %v1221_v35 = vmul.f32 %v1722_v18, %v1218_v14  ;;  %v1208_v47 = vrot.slane %v1201_v3, 4  ;;  %v1225_v18 = vrot.slane %v1219_v45, 4 }
 0x172   : > { %v1228_v59 = vrot.slane %v1221_v35, 4 }
 0x173   : > { %v1110_v38 = vpop.permute.xlu1 %1109 }
 0x174   : > { %v1114_v58 = vadd.f32 %v1110_v38, %v1093_v52  ;;  %v1226_v38 = vrot.slane %v1220_v53, 4 }
 0x175   : > { %v1108_v23 = vpop.permute.xlu0 %1107  ;;  %v1250_v9 = vpop.permute.xlu2 %1249 }
 0x176   : > { %v1113_v2 = vadd.f32 %v1108_v23, %v1092_v43  ;;  %v1229_v32 = vsel %vm1207_vm7, %v1226_v38, %v1228_v59  ;;  %v1227_v50 = vsel %vm1207_vm7, %v1225_v18, %v1226_v38 }
 0x178   : > { %v1134_v30 = vadd.f32 %v1129_v16, %v1113_v2 }
 0x17b   : > { %v1150_v39 = vpop.permute.xlu1 %1149 }
 0x17c   : > { %v1155_v46 = vadd.f32 %v1150_v39, %v1134_v30 }
 0x17d   : > { %v1131_v36 = vpop.permute.xlu0 %1130  ;;  %v1290_v31 = vpop.permute.xlu2 %1289 }
 0x17e   : > { %v1135_v48 = vadd.f32 %v1131_v36, %v1114_v58 }
 0x180   : > { %v1156_v60 = vadd.f32 %v1152_v20, %v1135_v48  ;;  %v1210_v20 = vsel %vm1207_vm7, %v1208_v47, %v1209_v37 }
 0x183   : > { %v1173_v5 = vpop.permute.xlu1 %1172 }
 0x184   : > { %v1177_v13 = vadd.f32 %v1173_v5, %v1156_v60 }
 0x185   : > { %v1171_v42 = vpop.permute.xlu0 %1170  ;;  %v1313_v25 = vpop.permute.xlu2 %1312 }
 0x186   : > { %v1176_v17 = vadd.f32 %v1171_v42, %v1155_v46 }
 0x188   : > { %v1197_v15 = vadd.f32 %v1192_v0, %v1176_v17 }
 0x18a   : > { %v1215_v10 = vadd.f32 %v1210_v20, %v1197_v15 }
 0x18b   : > { %v1248_v44 = vpop.permute.xlu1 %1247 }
 0x18c   : > { %v1232_v24 = vadd.f32 %v1227_v50, %v1215_v10 }
 0x18d   : > { %v1194_v6 = vpop.permute.xlu0 %1193  ;;  %v1353_v56 = vpop.permute.xlu2 %1352 }
 0x18e   : > { %v1198_v16 = vadd.f32 %v1194_v6, %v1177_v13  ;;  %v1253_v26 = vadd.f32 %v1248_v44, %v1232_v24 }
 0x190   : > { %v1216_v23 = vadd.f32 %v1212_v61, %v1198_v16 }
 0x192   : > { %v1233_v33 = vadd.f32 %v1229_v32, %v1216_v23 }
 0x193   : > { %v1271_v19 = vpop.permute.xlu1 %1270 }
 0x194   : > { %v1254_v40 = vadd.f32 %v1250_v9, %v1233_v33 }
 0x195   : > { %v1269_v54 = vpop.permute.xlu0 %1268  ;;  %v1376_v1 = vpop.permute.xlu2 %1375 }
 0x196   : > { %v1275_v21 = vadd.f32 %v1271_v19, %v1254_v40  ;;  %v1274_v28 = vadd.f32 %v1269_v54, %v1253_v26 }
 0x198   : > { %v1295_v39 = vadd.f32 %v1290_v31, %v1274_v28 }
 0x19b   : > { %v1311_v7 = vpop.permute.xlu1 %1310 }
 0x19c   : > { %v1316_v4 = vadd.f32 %v1311_v7, %v1295_v39 }
 0x19d   : > { %v1292_v41 = vpop.permute.xlu0 %1291 }
 0x19e   : > { %v1296_v29 = vadd.f32 %v1292_v41, %v1275_v21 }
 0x1a0   : > { %v1317_v36 = vadd.f32 %v1313_v25, %v1296_v29 }
 0x1a3   : > { %v1334_v57 = vpop.permute.xlu1 %1333 }
 0x1a4   : > { %v1338_v51 = vadd.f32 %v1334_v57, %v1317_v36 }
 0x1a5   : > { %v1332_v11 = vpop.permute.xlu0 %1331 }
 0x1a6   : > { %v1337_v63 = vadd.f32 %v1332_v11, %v1316_v4 }
 0x1a8   : > { %v1358_v5 = vadd.f32 %v1353_v56, %v1337_v63 }
 0x1ab   : > { %v1374_v0 = vpop.permute.xlu1 %1373 }
 0x1ac   : > { %v1379_v42 = vadd.f32 %v1374_v0, %v1358_v5 }
 0x1ad   : > { %v1355_v27 = vpop.permute.xlu0 %1354 }
 0x1ae   : > { %v1359_v12 = vadd.f32 %v1355_v27, %v1338_v51 }
 0x1b0   : > { %v1380_v8 = vadd.f32 %v1376_v1, %v1359_v12 }
 0x1b3   : > { %v1397_v62 = vpop.permute.xlu1 %1396 }
 0x1b4   : > { %v1401_v9 = vadd.f32 %v1397_v62, %v1380_v8 }
 0x1b5   : > { %v1395_v52 = vpop.permute.xlu0 %1394 }
 0x1b6   : > { %v1400_v43 = vadd.f32 %v1395_v52, %v1379_v42  ;;  %v1403_v58 = vsub.f32 0.0, %v1401_v9 }
 0x1b8   : > { %v1402_v2 = vsub.f32 0.0, %v1400_v43  ;;  %v1406_v44 = vmul.f32 1.442695, %v1403_v58 }
 0x1ba   : > { %v1404_v48 = vmul.f32 1.442695, %v1402_v2  ;;  %1712 = vpow2.f32 %v1406_v44 }
 0x1bc   : > { %1714 = vpow2.f32 %v1404_v48 }
 0x1c0   : > { %v1713_v49 = vpop.eup %1712 }
 0x1c1   : > { %v1409_v22 = vadd.f32 1.0, %v1713_v49 }
 0x1c2   : > { %v1715_v6 = vpop.eup %1714 }
 0x1c3   : > { %v1408_v30 = vadd.f32 1.0, %v1715_v6  ;;  %1716 = vrcp.f32 %v1409_v22  ;;  %v1436_v34 = vand.u32 2147483648, %v1409_v22  ;;  %v1434_v13 = vand.u32 2147483647, %v1409_v22 }
 0x1c4   : > { %vm1430_vm10 = vweird.f32 %v1409_v22 }
 0x1c5   : > { %1718 = vrcp.f32 %v1408_v30  ;;  %v1421_v17 = vand.u32 2147483648, %v1408_v30  ;;  %v1419_v53 = vand.u32 2147483647, %v1408_v30  ;;  %v1437_v47 = vor.u32 1.1754944e-38, %v1436_v34 }
 0x1c6   : > { %vm1415_vm13 = vweird.f32 %v1408_v30  ;;  %vm1435_vm14 = vcmp.eq.f32.partialorder %v1434_v13, 8.507059e+37 }
 0x1c7   : > { %v1422_v54 = vor.u32 1.1754944e-38, %v1421_v17  ;;  %vm1420_vm0 = vcmp.eq.f32.partialorder %v1419_v53, 8.507059e+37 }
 0x1c9   : > { %v1717_v55 = vpop.eup %1716 }
 0x1ca   : > { %v1426_v3 = vmul.f32 %v1717_v55, %v1409_v22  ;;  %vm1431_vm8 = vweird.f32 %v1717_v55 }
 0x1cb   : > { %v1719_v60 = vpop.eup %1718  ;;  %vm1432_vm12 = vmor %vm1430_vm10, %vm1431_vm8 }
 0x1cc   : > { %v1411_v14 = vmul.f32 %v1719_v60, %v1408_v30  ;;  %v1427_v46 = vsub.f32 1.0, %v1426_v3  ;;  %vm1416_vm9 = vweird.f32 %v1719_v60 }
 0x1cd   : > { %vm1417_vm15 = vmor %vm1415_vm13, %vm1416_vm9 }
 0x1ce   : > { %v1412_v35 = vsub.f32 1.0, %v1411_v14  ;;  %v1428_v31 = vmul.f32 %v1717_v55, %v1427_v46 }
 0x1d0   : > { %v1413_v37 = vmul.f32 %v1719_v60, %v1412_v35  ;;  %v1429_v19 = vadd.f32 %v1717_v55, %v1428_v31 }
 0x1d2   : > { %v1414_v45 = vadd.f32 %v1719_v60, %v1413_v37  ;;  %v1433_v16 = vsel %vm1432_vm12, %v1717_v55, %v1429_v19 }
 0x1d3   : > { %v1438_v61 = vsel %vm1435_vm14, %v1437_v47, %v1433_v16 }
 0x1d4   : > { %v1418_v59 = vsel %vm1417_vm15, %v1719_v60, %v1414_v45  ;;  %1442 = vst.msk [vmem:[%s1945_s25 + $0x8] sm:$0xff] %vm1440_vm11, %v1438_v61 }
 0x1d5   : > { %v1423_v15 = vsel %vm1420_vm0, %v1422_v54, %v1418_v59 }
 0x1d6   : > { %1441 = vst.msk [vmem:[%s1945_s25] sm:$0xff] %vm1440_vm11, %v1423_v15 }
 0x1d7 PF: > { %s1619_s7 = sshll.u32 %s1824_s13, 4  ;;  %s1456_s26 = sshll.u32 %s1945_s25, 4  ;;  %s1457_s26 = int_to_ptr.vmem [resolvable:$true] %s1456_s26 }
 0x1d8   : > { %s1455_s21 = scalar_lea.hbm %s2765_s2, %s1619_s7  ;;  %s1444_s29 = scalar_lea.sflag [#allocation5], %s173_s30 }
 0x1d9   : > { %s1458_s27 = sshll.u32 %s1455_s21, 4  ;;  %s1758_s13 = scalar_lea.hbm %s2765_s2, 32  ;;  %s1459_s27 = int_to_ptr.hbm [resolvable:$true] %s1458_s27 }
 0x1da   : > { %s1752_s12 = sshra.s32 %s1459_s27, 4  ;;  %s1753_s12 = int_to_ptr.hbm [resolvable:$true] %s1752_s12 }
 0x1db   : > { %s1754_s5 = scalar_lea.hbm %s1753_s12, 16  ;;  %p1759_p10 = scmp.lt.s32.totalorder %s1753_s12, %s2765_s2 }
 0x1dc   : > { %p1755_p6 = scmp.ne.s32.totalorder %s1753_s12, %s1754_s5  ;;  %p1760_p11 = scmp.lt.s32.totalorder %s1758_s13, %s1754_s5 }
 0x1de   : > { %p1756_p7 = pnand %p1755_p6, %p1912_p3  ;;  %p1761_p12 = por %p1760_p11, %p1759_p10 }
 0x1e0   : > { %p1757_p8 = pneg %p1756_p7 }
 0x1e2   : > { %p1762_p13 = pnand %p1761_p12, %p1757_p8 }
 0x1e4   : > { %1765 = shalt.err (!%p1762_p13)
}
 0x1e5   : > { %s1845_s30 = smov 128   ;;  %s1846_s25 = smov 8  }
 0x1e6   : > { %1626 = dma.vmem_to_hbm [thread:$0]  (%p1912_p3), %s1457_s26, 256, %s1459_s27, %s1444_s29, %s1845_s30, %s1845_s30, %s1846_s25  }
 0x1e7 PF: > { %p1638_p0 = scmp.ge.s32.totalorder %s1836_s16, 2  ;;  %s1473_s6 = sand.u32 1, %s1808_s9  }
 0x1e8   : > { %s1474_s7 = scalar_lea.sflag [#allocation5], %s1473_s6 }
 0x1e9   : > { %p1633_p1 = pnand %p1638_p0, %p1922_p9 }
 0x1eb   : > { %p1634_p2 = pneg %p1633_p1 }
 0x1ed   : > { %1803 = dma.done.wait (%p1634_p2), %s1474_s7, 256  }
 0x1ee   : > { %1805 = vsyncadd (%p1634_p2), %s1474_s7, 4294967040  ;;  %s16_s16 = sadd.s32 1, %s1836_s16   ;;  %s2825_s9 = smov %s1812_s10 }
 0x1ef   : > { %p13_p4 = scmp.ge.s32.totalorder %s16_s16, 6   ;;  %s2826_s10 = smov %s1816_s11 }
 0x1f0   : > { %s2827_s11 = smov %s1932_s28  ;;  %s2828_s12 = smov %s1828_s14 }
 0x1f1   : > { %s2829_s13 = smov %s1832_s15  ;;  %s2830_s14 = smov %s2833_s19 }
 0x1f2   : > { %s2831_s15 = smov %s2837_s20  ;;  %15 = sbr.rel (!%p13_p4) target bundleno = 6 (0x6), region = 76 }
 0x1f7   :  { %1480 = vsyncpa [#allocation5], 1 }
 0x1f8   :  { %1482 = vsyncpa [#allocation5 + $0x1], 1 }
 0x1f9   :  { %1483 = vsyncpa [#allocation6], 1 }
 0x1fa   :  { %1485 = vsyncpa [#allocation6 + $0x1], 1 }

</bundles_post_ra>
